<compile_context>
chip_gen: v5e
topology: v5e:2x2
jax: 0.10.0
libtpu: 0.0.40
codegen_flags: <defaults>
</compile_context>

<pallas_src>
import functools

import jax
import jax.numpy as jnp
from jax.experimental import pallas as pl
from jax.experimental.pallas import tpu as pltpu


def _full2d(shape):
    """Single full-array 2-D block for a 1-axis grid."""
    return pl.BlockSpec(shape, lambda i: (0, 0))


def _pick_row_tile(n, cap=512):
    """Largest row tile that is a multiple of 8, divides n, and is <= cap.

    Prefers >= 2 tiles when possible so the 'parallel' grid axis can be
    sharded across both TensorCores on v7x.  Falls back to the full axis.
    """
    limit = min(cap, n // 2 if n >= 16 else n)
    t = max(8, (limit // 8) * 8)
    while t >= 8:
        if n % t == 0:
            return t
        t -= 8
    return n


# ----------------------------- Pallas kernels ------------------------------

def _proj_kernel(x_ref, w_ref, acat_ref, xw_ref, ae_ref):
    """xw = x @ W (bf16 MXU, f32 acc); ae = xw @ [A_src | A_dst]."""
    xw = jnp.dot(x_ref[...].astype(jnp.bfloat16), w_ref[...],
                 preferred_element_type=jnp.float32)          # (T, hd) f32
    ae_ref[...] = jnp.dot(xw, acat_ref[...],
                          preferred_element_type=jnp.float32)  # (T, 2*heads)
    xw_ref[...] = xw.astype(xw_ref.dtype)                      # bf16 for attn matmul


def _attn_kernel(a_dst_ref, a_srcT_ref, xw_ref, mask_ref, scale_ref, shift_ref,
                 o_ref, *, heads, dh):
    """Fused per-target-tile attention + bias + BN(eval) + ReLU epilogue."""
    a_dst = a_dst_ref[...]                       # (T, heads) f32
    a_srcT = a_srcT_ref[...]                     # (heads, N) f32
    xw = xw_ref[...]                             # (N, heads*dh) bf16
    mask = mask_ref[...].astype(jnp.float32)     # (T, N): 0 on edges, -1e30 off
    outs = []
    for h in range(heads):                       # heads is small & static
        e = a_dst[:, h:h + 1] + a_srcT[h:h + 1, :]        # (T, N) logits
        e = jnp.where(e > 0, e, 0.2 * e)                  # LeakyReLU(0.2)
        e = e + mask                                      # additive edge mask
        m = jnp.max(e, axis=1, keepdims=True)
        p = jnp.exp(e - m)                                # masked -> underflows to 0
        l = jnp.sum(p, axis=1, keepdims=True)             # > 0 (self-loops)
        acc = jnp.dot(p.astype(jnp.bfloat16), xw[:, h * dh:(h + 1) * dh],
                      preferred_element_type=jnp.float32)  # (T, dh)
        outs.append(acc * pl.reciprocal(l, approx=True))   # normalize after matmul
    y = jnp.concatenate(outs, axis=-1)                     # (T, heads*dh)
    # folded (conv bias + BatchNorm eval) affine, then ReLU
    y = y * scale_ref[...] + shift_ref[...]
    o_ref[...] = jnp.maximum(y, 0.0).astype(o_ref.dtype)


def _pool_mlp_kernel(oh_ref, x_ref, w1_ref, b1_ref, s1_ref, t1_ref,
                     w2_ref, b2_ref, s2_ref, t2_ref, w3_ref, b3_ref, o_ref):
    """global_add_pool (as onehot matmul) + full MLP head in one kernel."""
    def lrelu(v):
        return jnp.where(v > 0, v, 0.2 * v)

    pooled = jnp.dot(oh_ref[...], x_ref[...],
                     preferred_element_type=jnp.float32)           # (G, hd)
    h = lrelu(jnp.dot(pooled, w1_ref[...],
                      preferred_element_type=jnp.float32) + b1_ref[...])
    h = h * s1_ref[...] + t1_ref[...]                              # BN1 (eval)
    h = lrelu(jnp.dot(h, w2_ref[...],
                      preferred_element_type=jnp.float32) + b2_ref[...])
    h = h * s2_ref[...] + t2_ref[...]                              # BN2 (eval)
    out = lrelu(jnp.dot(h, w3_ref[...],
                        preferred_element_type=jnp.float32) + b3_ref[...])
    o_ref[...] = out.astype(o_ref.dtype)


# ------------------------------ layer wrappers ------------------------------

def gat_layer(x, mask_b, conv, bn, heads, dh, eps=1e-5):
    """One fused GATConv + BN(eval) + ReLU layer (2 pallas_calls)."""
    n, fin = x.shape
    hd = heads * dh

    # ---- parameter folding (tiny, trace-time) ----
    w_bf = conv["lin_w"].astype(jnp.bfloat16)                      # (fin, hd)
    eye = jnp.eye(heads, dtype=jnp.float32)
    a_src_mat = (conv["att_src"][:, :, None] * eye[:, None, :]).reshape(hd, heads)
    a_dst_mat = (conv["att_dst"][:, :, None] * eye[:, None, :]).reshape(hd, heads)
    acat = jnp.concatenate([a_src_mat, a_dst_mat], axis=1)         # (hd, 2*heads)
    scale = bn["gamma"] * jax.lax.rsqrt(bn["rv"] + eps)            # (hd,)
    shift = bn["beta"] - bn["rm"] * scale + conv["bias"] * scale   # (hd,)

    # ---- (A) projection + attention-logit reductions ----
    tile_p = _pick_row_tile(n)
    xw_bf, ae = pl.pallas_call(
        _proj_kernel,
        out_shape=(jax.ShapeDtypeStruct((n, hd), jnp.bfloat16),
                   jax.ShapeDtypeStruct((n, 2 * heads), jnp.float32)),
        grid=(n // tile_p,),
        in_specs=[pl.BlockSpec((tile_p, fin), lambda i: (i, 0)),
                  pl.BlockSpec((fin, hd), lambda i: (0, 0)),
                  pl.BlockSpec((hd, 2 * heads), lambda i: (0, 0))],
        out_specs=(pl.BlockSpec((tile_p, hd), lambda i: (i, 0)),
                   pl.BlockSpec((tile_p, 2 * heads), lambda i: (i, 0))),
        compiler_params=pltpu.CompilerParams(dimension_semantics=("parallel",)),
    )(x, w_bf, acat)

    a_srcT = jnp.transpose(ae[:, :heads])      # (heads, N) — tiny wrapper transpose
    a_dst = ae[:, heads:]                      # (N, heads)

    # ---- (B) attention + bias + BN + ReLU, tiled over target rows ----
    # TODO(synk): for very large N the source axis should also be tiled with a
    # flash-style online softmax; here the full (N, hd) projection stays resident.
    tile_t = _pick_row_tile(n)
    kern = functools.partial(_attn_kernel, heads=heads, dh=dh)
    y = pl.pallas_call(
        kern,
        out_shape=jax.ShapeDtypeStruct((n, hd), jnp.float32),
        grid=(n // tile_t,),
        in_specs=[pl.BlockSpec((tile_t, heads), lambda i: (i, 0)),
                  pl.BlockSpec((heads, n), lambda i: (0, 0)),
                  pl.BlockSpec((n, hd), lambda i: (0, 0)),
                  pl.BlockSpec((tile_t, n), lambda i: (i, 0)),
                  pl.BlockSpec((1, hd), lambda i: (0, 0)),
                  pl.BlockSpec((1, hd), lambda i: (0, 0))],
        out_specs=pl.BlockSpec((tile_t, hd), lambda i: (i, 0)),
        compiler_params=pltpu.CompilerParams(dimension_semantics=("parallel",)),
    )(a_dst, a_srcT, xw_bf, mask_b, scale.reshape(1, hd), shift.reshape(1, hd))
    return y


def gat_forward(params, x, mask_b, batch, *, num_graphs, heads, dh, eps=1e-5):
    for conv, bn in zip(params["convs"], params["bn"]):
        x = gat_layer(x, mask_b, conv, bn, heads, dh)
        # F.dropout(training=False) -> identity

    n, hd = x.shape
    mlp = params["mlp"]
    latent = mlp["w3"].shape[1]
    onehot = (batch[None, :] == jnp.arange(num_graphs)[:, None]).astype(jnp.float32)

    s1 = mlp["bn1"]["gamma"] * jax.lax.rsqrt(mlp["bn1"]["rv"] + eps)
    t1 = mlp["bn1"]["beta"] - mlp["bn1"]["rm"] * s1
    s2 = mlp["bn2"]["gamma"] * jax.lax.rsqrt(mlp["bn2"]["rv"] + eps)
    t2 = mlp["bn2"]["beta"] - mlp["bn2"]["rm"] * s2

    out = pl.pallas_call(
        _pool_mlp_kernel,
        out_shape=jax.ShapeDtypeStruct((num_graphs, latent), jnp.float32),
        grid=(1,),
        in_specs=[_full2d((num_graphs, n)),           # onehot pool matrix
                  _full2d((n, hd)),                   # node features
                  _full2d((hd, hd)), _full2d((1, hd)),
                  _full2d((1, hd)), _full2d((1, hd)),
                  _full2d((hd, hd)), _full2d((1, hd)),
                  _full2d((1, hd)), _full2d((1, hd)),
                  _full2d((hd, latent)), _full2d((1, latent))],
        out_specs=_full2d((num_graphs, latent)),
    )(onehot, x,
      mlp["w1"], mlp["b1"].reshape(1, hd), s1.reshape(1, hd), t1.reshape(1, hd),
      mlp["w2"], mlp["b2"].reshape(1, hd), s2.reshape(1, hd), t2.reshape(1, hd),
      mlp["w3"], mlp["b3"].reshape(1, latent))
    return out


# ------------------------- parameters & driver ------------------------------

def init_params(key, input_dim, hidden_dim, latent_dim, n_layers, heads=4):
    dh = hidden_dim // heads
    params = {"convs": [], "bn": [], "mlp": {}}
    dims_in = [input_dim] + [hidden_dim] * (n_layers - 1)
    for i in range(n_layers):
        key, k1, k2, k3, kg, kb = jax.random.split(key, 6)
        fan_in = dims_in[i]
        params["convs"].append(dict(
            lin_w=jax.random.normal(k1, (fan_in, hidden_dim), jnp.float32) / jnp.sqrt(fan_in),
            att_src=0.1 * jax.random.normal(k2, (heads, dh), jnp.float32),
            att_dst=0.1 * jax.random.normal(k3, (heads, dh), jnp.float32),
            bias=0.01 * jnp.arange(hidden_dim, dtype=jnp.float32),
        ))
        params["bn"].append(dict(
            gamma=1.0 + 0.1 * jax.random.normal(kg, (hidden_dim,), jnp.float32),
            beta=0.1 * jax.random.normal(kb, (hidden_dim,), jnp.float32),
            rm=jnp.zeros((hidden_dim,), jnp.float32),
            rv=jnp.ones((hidden_dim,), jnp.float32),
        ))
    # MLP: Lin(h,h) LReLU BN Lin(h,h) LReLU BN Lin(h,latent) LReLU
    mlp = {}
    sizes = [(hidden_dim, hidden_dim), (hidden_dim, hidden_dim), (hidden_dim, latent_dim)]
    for j, (din, dout) in enumerate(sizes, start=1):
        key, kw, kb2 = jax.random.split(key, 3)
        mlp[f"w{j}"] = jax.random.normal(kw, (din, dout), jnp.float32) / jnp.sqrt(din)
        mlp[f"b{j}"] = 0.05 * jax.random.normal(kb2, (dout,), jnp.float32)
    for j in (1, 2):
        key, kg, kb3 = jax.random.split(key, 3)
        mlp[f"bn{j}"] = dict(
            gamma=1.0 + 0.1 * jax.random.normal(kg, (hidden_dim,), jnp.float32),
            beta=0.1 * jax.random.normal(kb3, (hidden_dim,), jnp.float32),
            rm=jnp.zeros((hidden_dim,), jnp.float32),
            rv=jnp.ones((hidden_dim,), jnp.float32),
        )
    params["mlp"] = mlp
    return params
    # TODO(synk): BatchNorm1d training-mode batch statistics not implemented; eval mode only.


if __name__ == "__main__":
    # Small, deterministic problem: 2 graphs x 16 nodes = 32 nodes total.
    INPUT_DIM, HIDDEN_DIM, LATENT_DIM, N_LAYERS, HEADS = 16, 32, 16, 2, 4
    DH = HIDDEN_DIM // HEADS
    NUM_GRAPHS, NODES_PER_GRAPH = 2, 16
    N = NUM_GRAPHS * NODES_PER_GRAPH
    EDGES_PER_GRAPH = 40

    key = jax.random.PRNGKey(0)
    key, kx = jax.random.split(key)
    x = jax.random.normal(kx, (N, INPUT_DIM), jnp.float32)

    # Random intra-graph edges -> dense adjacency adj[target, source], + self loops.
    adj = jnp.zeros((N, N), jnp.float32)
    for g in range(NUM_GRAPHS):
        key, ks, kd = jax.random.split(key, 3)
        lo, hi = g * NODES_PER_GRAPH, (g + 1) * NODES_PER_GRAPH
        src = jax.random.randint(ks, (EDGES_PER_GRAPH,), lo, hi)
        dst = jax.random.randint(kd, (EDGES_PER_GRAPH,), lo, hi)
        adj = adj.at[dst, src].set(1.0)
    adj = adj.at[jnp.arange(N), jnp.arange(N)].set(1.0)   # add_self_loops=True
    # Additive attention mask in bf16: 0 on edges, -1e30 off-edge (exp -> 0).
    mask_b = ((adj - 1.0) * jnp.float32(1e30)).astype(jnp.bfloat16)
    batch = jnp.repeat(jnp.arange(NUM_GRAPHS, dtype=jnp.int32), NODES_PER_GRAPH)

    key, kp = jax.random.split(key)
    params = init_params(kp, INPUT_DIM, HIDDEN_DIM, LATENT_DIM, N_LAYERS, HEADS)

    fwd = jax.jit(functools.partial(gat_forward, num_graphs=NUM_GRAPHS,
                                    heads=HEADS, dh=DH))
    out = fwd(params, x, mask_b, batch)
    out = jax.block_until_ready(out)
    assert out.shape == (NUM_GRAPHS, LATENT_DIM) and out.dtype == jnp.float32
    assert bool(jnp.all(jnp.isfinite(out)))
    print("KERNEL_OK")
</pallas_src>

<mosaic_0001>
module attributes {stable_mosaic.version = 11 : i64} {
  func.func @_proj_kernel(%arg0: i32, %arg1: memref<16x16xf32, #tpu.memory_space<vmem>>, %arg2: memref<16x32xbf16, #tpu.memory_space<vmem>>, %arg3: memref<32x8xf32, #tpu.memory_space<vmem>>, %arg4: memref<16x32xbf16, #tpu.memory_space<vmem>>, %arg5: memref<16x8xf32, #tpu.memory_space<vmem>>) attributes {dimension_semantics = [#tpu.dimension_semantics<parallel>], iteration_bounds = array<i64: 2>, scalar_prefetch = 0 : i64, scratch_operands = 0 : i64, tpu.core_type = #tpu.core_type<tc>, window_params = [{transform_indices = @transform_0, window_bounds = array<i64: 16, 16>}, {pipeline_mode = #tpu.pipeline_mode<synchronous>, transform_indices = @transform_1, window_bounds = array<i64: 16, 32>}, {pipeline_mode = #tpu.pipeline_mode<synchronous>, transform_indices = @transform_2, window_bounds = array<i64: 32, 8>}, {transform_indices = @transform_3, window_bounds = array<i64: 16, 32>}, {transform_indices = @transform_4, window_bounds = array<i64: 16, 8>}]} {
    %c0 = arith.constant 0 : index
    %c0_0 = arith.constant 0 : index
    %0 = vector.load %arg1[%c0, %c0_0] : memref<16x16xf32, #tpu.memory_space<vmem>>, vector<16x16xf32>
    %1 = arith.truncf %0 : vector<16x16xf32> to vector<16x16xbf16>
    %c0_1 = arith.constant 0 : index
    %c0_2 = arith.constant 0 : index
    %2 = vector.load %arg2[%c0_1, %c0_2] : memref<16x32xbf16, #tpu.memory_space<vmem>>, vector<16x32xbf16>
    %cst = arith.constant dense<0.000000e+00> : vector<16x32xf32>
    %3 = tpu.matmul %1, %2, %cst {dimension_numbers = #tpu.dot_dimension_numbers<[1], [0], [0], [1], [0, 0, 1, 1], [], []>} : vector<16x16xbf16>, vector<16x32xbf16>, vector<16x32xf32> -> vector<16x32xf32>
    %c0_3 = arith.constant 0 : index
    %c0_4 = arith.constant 0 : index
    %4 = vector.load %arg3[%c0_3, %c0_4] : memref<32x8xf32, #tpu.memory_space<vmem>>, vector<32x8xf32>
    %cst_5 = arith.constant dense<0.000000e+00> : vector<16x8xf32>
    %5 = tpu.matmul %3, %4, %cst_5 {dimension_numbers = #tpu.dot_dimension_numbers<[1], [0], [0], [1], [0, 0, 1, 1], [], []>} : vector<16x32xf32>, vector<32x8xf32>, vector<16x8xf32> -> vector<16x8xf32>
    %c0_6 = arith.constant 0 : index
    %c0_7 = arith.constant 0 : index
    %6 = vector.load %arg5[%c0_6, %c0_7] : memref<16x8xf32, #tpu.memory_space<vmem>>, vector<16x8xf32>
    tpu.vector_store %arg5[%c0_6, %c0_7], %5 {strides = array<i32>} : memref<16x8xf32, #tpu.memory_space<vmem>>, vector<16x8xf32>,
    %7 = arith.truncf %3 : vector<16x32xf32> to vector<16x32xbf16>
    %c0_8 = arith.constant 0 : index
    %c0_9 = arith.constant 0 : index
    %8 = vector.load %arg4[%c0_8, %c0_9] : memref<16x32xbf16, #tpu.memory_space<vmem>>, vector<16x32xbf16>
    tpu.vector_store %arg4[%c0_8, %c0_9], %7 {strides = array<i32>} : memref<16x32xbf16, #tpu.memory_space<vmem>>, vector<16x32xbf16>,
    return
  }
  func.func @transform_0(%arg0: i32) -> (i32, i32) {
    %c0_i32 = arith.constant 0 : i32
    %c0_i32_0 = arith.constant 0 : i32
    return %arg0, %c0_i32 : i32, i32
  }
  func.func @transform_1(%arg0: i32) -> (i32, i32) {
    %c0_i32 = arith.constant 0 : i32
    %c0_i32_0 = arith.constant 0 : i32
    %c0_i32_1 = arith.constant 0 : i32
    return %c0_i32, %c0_i32_0 : i32, i32
  }
  func.func @transform_2(%arg0: i32) -> (i32, i32) {
    %c0_i32 = arith.constant 0 : i32
    %c0_i32_0 = arith.constant 0 : i32
    %c0_i32_1 = arith.constant 0 : i32
    return %c0_i32, %c0_i32_0 : i32, i32
  }
  func.func @transform_3(%arg0: i32) -> (i32, i32) {
    %c0_i32 = arith.constant 0 : i32
    %c0_i32_0 = arith.constant 0 : i32
    return %arg0, %c0_i32 : i32, i32
  }
  func.func @transform_4(%arg0: i32) -> (i32, i32) {
    %c0_i32 = arith.constant 0 : i32
    %c0_i32_0 = arith.constant 0 : i32
    return %arg0, %c0_i32 : i32, i32
  }
}

module attributes {stable_mosaic.version = 11 : i64} {
  func.func @_proj_kernel(%arg0: i32, %arg1: memref<16x32xf32, #tpu.memory_space<vmem>>, %arg2: memref<32x32xbf16, #tpu.memory_space<vmem>>, %arg3: memref<32x8xf32, #tpu.memory_space<vmem>>, %arg4: memref<16x32xbf16, #tpu.memory_space<vmem>>, %arg5: memref<16x8xf32, #tpu.memory_space<vmem>>) attributes {dimension_semantics = [#tpu.dimension_semantics<parallel>], iteration_bounds = array<i64: 2>, scalar_prefetch = 0 : i64, scratch_operands = 0 : i64, tpu.core_type = #tpu.core_type<tc>, window_params = [{transform_indices = @transform_0, window_bounds = array<i64: 16, 32>}, {pipeline_mode = #tpu.pipeline_mode<synchronous>, transform_indices = @transform_1, window_bounds = array<i64: 32, 32>}, {pipeline_mode = #tpu.pipeline_mode<synchronous>, transform_indices = @transform_2, window_bounds = array<i64: 32, 8>}, {transform_indices = @transform_3, window_bounds = array<i64: 16, 32>}, {transform_indices = @transform_4, window_bounds = array<i64: 16, 8>}]} {
    %c0 = arith.constant 0 : index
    %c0_0 = arith.constant 0 : index
    %0 = vector.load %arg1[%c0, %c0_0] : memref<16x32xf32, #tpu.memory_space<vmem>>, vector<16x32xf32>
    %1 = arith.truncf %0 : vector<16x32xf32> to vector<16x32xbf16>
    %c0_1 = arith.constant 0 : index
    %c0_2 = arith.constant 0 : index
    %2 = vector.load %arg2[%c0_1, %c0_2] : memref<32x32xbf16, #tpu.memory_space<vmem>>, vector<32x32xbf16>
    %cst = arith.constant dense<0.000000e+00> : vector<16x32xf32>
    %3 = tpu.matmul %1, %2, %cst {dimension_numbers = #tpu.dot_dimension_numbers<[1], [0], [0], [1], [0, 0, 1, 1], [], []>} : vector<16x32xbf16>, vector<32x32xbf16>, vector<16x32xf32> -> vector<16x32xf32>
    %c0_3 = arith.constant 0 : index
    %c0_4 = arith.constant 0 : index
    %4 = vector.load %arg3[%c0_3, %c0_4] : memref<32x8xf32, #tpu.memory_space<vmem>>, vector<32x8xf32>
    %cst_5 = arith.constant dense<0.000000e+00> : vector<16x8xf32>
    %5 = tpu.matmul %3, %4, %cst_5 {dimension_numbers = #tpu.dot_dimension_numbers<[1], [0], [0], [1], [0, 0, 1, 1], [], []>} : vector<16x32xf32>, vector<32x8xf32>, vector<16x8xf32> -> vector<16x8xf32>
    %c0_6 = arith.constant 0 : index
    %c0_7 = arith.constant 0 : index
    %6 = vector.load %arg5[%c0_6, %c0_7] : memref<16x8xf32, #tpu.memory_space<vmem>>, vector<16x8xf32>
    tpu.vector_store %arg5[%c0_6, %c0_7], %5 {strides = array<i32>} : memref<16x8xf32, #tpu.memory_space<vmem>>, vector<16x8xf32>,
    %7 = arith.truncf %3 : vector<16x32xf32> to vector<16x32xbf16>
    %c0_8 = arith.constant 0 : index
    %c0_9 = arith.constant 0 : index
    %8 = vector.load %arg4[%c0_8, %c0_9] : memref<16x32xbf16, #tpu.memory_space<vmem>>, vector<16x32xbf16>
    tpu.vector_store %arg4[%c0_8, %c0_9], %7 {strides = array<i32>} : memref<16x32xbf16, #tpu.memory_space<vmem>>, vector<16x32xbf16>,
    return
  }
  func.func @transform_0(%arg0: i32) -> (i32, i32) {
    %c0_i32 = arith.constant 0 : i32
    %c0_i32_0 = arith.constant 0 : i32
    return %arg0, %c0_i32 : i32, i32
  }
  func.func @transform_1(%arg0: i32) -> (i32, i32) {
    %c0_i32 = arith.constant 0 : i32
    %c0_i32_0 = arith.constant 0 : i32
    %c0_i32_1 = arith.constant 0 : i32
    return %c0_i32, %c0_i32_0 : i32, i32
  }
  func.func @transform_2(%arg0: i32) -> (i32, i32) {
    %c0_i32 = arith.constant 0 : i32
    %c0_i32_0 = arith.constant 0 : i32
    %c0_i32_1 = arith.constant 0 : i32
    return %c0_i32, %c0_i32_0 : i32, i32
  }
  func.func @transform_3(%arg0: i32) -> (i32, i32) {
    %c0_i32 = arith.constant 0 : i32
    %c0_i32_0 = arith.constant 0 : i32
    return %arg0, %c0_i32 : i32, i32
  }
  func.func @transform_4(%arg0: i32) -> (i32, i32) {
    %c0_i32 = arith.constant 0 : i32
    %c0_i32_0 = arith.constant 0 : i32
    return %arg0, %c0_i32 : i32, i32
  }
}

module attributes {stable_mosaic.version = 11 : i64} {
  func.func @_attn_kernel(%arg0: i32, %arg1: memref<16x4xf32, #tpu.memory_space<vmem>>, %arg2: memref<4x32xf32, #tpu.memory_space<vmem>>, %arg3: memref<32x32xbf16, #tpu.memory_space<vmem>>, %arg4: memref<16x32xbf16, #tpu.memory_space<vmem>>, %arg5: memref<1x32xf32, #tpu.memory_space<vmem>>, %arg6: memref<1x32xf32, #tpu.memory_space<vmem>>, %arg7: memref<16x32xf32, #tpu.memory_space<vmem>>) attributes {dimension_semantics = [#tpu.dimension_semantics<parallel>], iteration_bounds = array<i64: 2>, scalar_prefetch = 0 : i64, scratch_operands = 0 : i64, tpu.core_type = #tpu.core_type<tc>, window_params = [{transform_indices = @transform_0, window_bounds = array<i64: 16, 4>}, {pipeline_mode = #tpu.pipeline_mode<synchronous>, transform_indices = @transform_1, window_bounds = array<i64: 4, 32>}, {pipeline_mode = #tpu.pipeline_mode<synchronous>, transform_indices = @transform_2, window_bounds = array<i64: 32, 32>}, {transform_indices = @transform_3, window_bounds = array<i64: 16, 32>}, {pipeline_mode = #tpu.pipeline_mode<synchronous>, transform_indices = @transform_4, window_bounds = array<i64: 1, 32>}, {pipeline_mode = #tpu.pipeline_mode<synchronous>, transform_indices = @transform_5, window_bounds = array<i64: 1, 32>}, {transform_indices = @transform_6, window_bounds = array<i64: 16, 32>}]} {
    %c0 = arith.constant 0 : index
    %c0_0 = arith.constant 0 : index
    %0 = vector.load %arg1[%c0, %c0_0] : memref<16x4xf32, #tpu.memory_space<vmem>>, vector<16x4xf32>
    %c0_1 = arith.constant 0 : index
    %c0_2 = arith.constant 0 : index
    %1 = vector.load %arg2[%c0_1, %c0_2] : memref<4x32xf32, #tpu.memory_space<vmem>>, vector<4x32xf32>
    %c0_3 = arith.constant 0 : index
    %c0_4 = arith.constant 0 : index
    %2 = vector.load %arg3[%c0_3, %c0_4] : memref<32x32xbf16, #tpu.memory_space<vmem>>, vector<32x32xbf16>
    %c0_5 = arith.constant 0 : index
    %c0_6 = arith.constant 0 : index
    %3 = vector.load %arg4[%c0_5, %c0_6] : memref<16x32xbf16, #tpu.memory_space<vmem>>, vector<16x32xbf16>
    %4 = arith.extf %3 : vector<16x32xbf16> to vector<16x32xf32>
    %5 = vector.extract_strided_slice %0 {offsets = [0, 0], sizes = [16, 1], strides = [1, 1]} : vector<16x4xf32> to vector<16x1xf32>
    %6 = vector.extract_strided_slice %1 {offsets = [0, 0], sizes = [1, 32], strides = [1, 1]} : vector<4x32xf32> to vector<1x32xf32>
    %7 = vector.broadcast %5 : vector<16x1xf32> to vector<16x32xf32>
    %8 = vector.broadcast %6 : vector<1x32xf32> to vector<16x32xf32>
    %9 = arith.addf %7, %8 : vector<16x32xf32>
    %cst = arith.constant 0.000000e+00 : f32
    %10 = vector.broadcast %cst : f32 to vector<16x32xf32>
    %11 = arith.cmpf ogt, %9, %10 : vector<16x32xf32>
    %cst_7 = arith.constant 2.000000e-01 : f32
    %12 = vector.broadcast %cst_7 : f32 to vector<16x32xf32>
    %13 = arith.mulf %12, %9 : vector<16x32xf32>
    %14 = arith.select %11, %9, %13 : vector<16x32xi1>, vector<16x32xf32>
    %15 = arith.addf %14, %4 : vector<16x32xf32>
    %cst_8 = arith.constant dense<0xFF800000> : vector<16xf32>
    %16 = vector.multi_reduction <maximumf>, %15, %cst_8 [1] : vector<16x32xf32> to vector<16xf32>
    %17 = vector.shape_cast %16 : vector<16xf32> to vector<16x1xf32>
    %18 = vector.broadcast %17 : vector<16x1xf32> to vector<16x32xf32>
    %19 = arith.subf %15, %18 : vector<16x32xf32>
    %20 = math.exp %19 : vector<16x32xf32>
    %cst_9 = arith.constant dense<0.000000e+00> : vector<16xf32>
    %21 = vector.multi_reduction <add>, %20, %cst_9 [1] : vector<16x32xf32> to vector<16xf32>
    %22 = vector.shape_cast %21 : vector<16xf32> to vector<16x1xf32>
    %23 = arith.truncf %20 : vector<16x32xf32> to vector<16x32xbf16>
    %24 = vector.extract_strided_slice %2 {offsets = [0, 0], sizes = [32, 8], strides = [1, 1]} : vector<32x32xbf16> to vector<32x8xbf16>
    %cst_10 = arith.constant dense<0.000000e+00> : vector<16x8xf32>
    %25 = tpu.matmul %23, %24, %cst_10 {dimension_numbers = #tpu.dot_dimension_numbers<[1], [0], [0], [1], [0, 0, 1, 1], [], []>} : vector<16x32xbf16>, vector<32x8xbf16>, vector<16x8xf32> -> vector<16x8xf32>
    %26 = tpu.reciprocal %22 {approx = true} : vector<16x1xf32> -> vector<16x1xf32>
    %27 = vector.broadcast %26 : vector<16x1xf32> to vector<16x8xf32>
    %28 = arith.mulf %25, %27 : vector<16x8xf32>
    %29 = vector.extract_strided_slice %0 {offsets = [0, 1], sizes = [16, 1], strides = [1, 1]} : vector<16x4xf32> to vector<16x1xf32>
    %30 = vector.extract_strided_slice %1 {offsets = [1, 0], sizes = [1, 32], strides = [1, 1]} : vector<4x32xf32> to vector<1x32xf32>
    %31 = vector.broadcast %29 : vector<16x1xf32> to vector<16x32xf32>
    %32 = vector.broadcast %30 : vector<1x32xf32> to vector<16x32xf32>
    %33 = arith.addf %31, %32 : vector<16x32xf32>
    %cst_11 = arith.constant 0.000000e+00 : f32
    %34 = vector.broadcast %cst_11 : f32 to vector<16x32xf32>
    %35 = arith.cmpf ogt, %33, %34 : vector<16x32xf32>
    %cst_12 = arith.constant 2.000000e-01 : f32
    %36 = vector.broadcast %cst_12 : f32 to vector<16x32xf32>
    %37 = arith.mulf %36, %33 : vector<16x32xf32>
    %38 = arith.select %35, %33, %37 : vector<16x32xi1>, vector<16x32xf32>
    %39 = arith.addf %38, %4 : vector<16x32xf32>
    %cst_13 = arith.constant dense<0xFF800000> : vector<16xf32>
    %40 = vector.multi_reduction <maximumf>, %39, %cst_13 [1] : vector<16x32xf32> to vector<16xf32>
    %41 = vector.shape_cast %40 : vector<16xf32> to vector<16x1xf32>
    %42 = vector.broadcast %41 : vector<16x1xf32> to vector<16x32xf32>
    %43 = arith.subf %39, %42 : vector<16x32xf32>
    %44 = math.exp %43 : vector<16x32xf32>
    %cst_14 = arith.constant dense<0.000000e+00> : vector<16xf32>
    %45 = vector.multi_reduction <add>, %44, %cst_14 [1] : vector<16x32xf32> to vector<16xf32>
    %46 = vector.shape_cast %45 : vector<16xf32> to vector<16x1xf32>
    %47 = arith.truncf %44 : vector<16x32xf32> to vector<16x32xbf16>
    %48 = vector.extract_strided_slice %2 {offsets = [0, 8], sizes = [32, 8], strides = [1, 1]} : vector<32x32xbf16> to vector<32x8xbf16>
    %cst_15 = arith.constant dense<0.000000e+00> : vector<16x8xf32>
    %49 = tpu.matmul %47, %48, %cst_15 {dimension_numbers = #tpu.dot_dimension_numbers<[1], [0], [0], [1], [0, 0, 1, 1], [], []>} : vector<16x32xbf16>, vector<32x8xbf16>, vector<16x8xf32> -> vector<16x8xf32>
    %50 = tpu.reciprocal %46 {approx = true} : vector<16x1xf32> -> vector<16x1xf32>
    %51 = vector.broadcast %50 : vector<16x1xf32> to vector<16x8xf32>
    %52 = arith.mulf %49, %51 : vector<16x8xf32>
    %53 = vector.extract_strided_slice %0 {offsets = [0, 2], sizes = [16, 1], strides = [1, 1]} : vector<16x4xf32> to vector<16x1xf32>
    %54 = vector.extract_strided_slice %1 {offsets = [2, 0], sizes = [1, 32], strides = [1, 1]} : vector<4x32xf32> to vector<1x32xf32>
    %55 = vector.broadcast %53 : vector<16x1xf32> to vector<16x32xf32>
    %56 = vector.broadcast %54 : vector<1x32xf32> to vector<16x32xf32>
    %57 = arith.addf %55, %56 : vector<16x32xf32>
    %cst_16 = arith.constant 0.000000e+00 : f32
    %58 = vector.broadcast %cst_16 : f32 to vector<16x32xf32>
    %59 = arith.cmpf ogt, %57, %58 : vector<16x32xf32>
    %cst_17 = arith.constant 2.000000e-01 : f32
    %60 = vector.broadcast %cst_17 : f32 to vector<16x32xf32>
    %61 = arith.mulf %60, %57 : vector<16x32xf32>
    %62 = arith.select %59, %57, %61 : vector<16x32xi1>, vector<16x32xf32>
    %63 = arith.addf %62, %4 : vector<16x32xf32>
    %cst_18 = arith.constant dense<0xFF800000> : vector<16xf32>
    %64 = vector.multi_reduction <maximumf>, %63, %cst_18 [1] : vector<16x32xf32> to vector<16xf32>
    %65 = vector.shape_cast %64 : vector<16xf32> to vector<16x1xf32>
    %66 = vector.broadcast %65 : vector<16x1xf32> to vector<16x32xf32>
    %67 = arith.subf %63, %66 : vector<16x32xf32>
    %68 = math.exp %67 : vector<16x32xf32>
    %cst_19 = arith.constant dense<0.000000e+00> : vector<16xf32>
    %69 = vector.multi_reduction <add>, %68, %cst_19 [1] : vector<16x32xf32> to vector<16xf32>
    %70 = vector.shape_cast %69 : vector<16xf32> to vector<16x1xf32>
    %71 = arith.truncf %68 : vector<16x32xf32> to vector<16x32xbf16>
    %72 = vector.extract_strided_slice %2 {offsets = [0, 16], sizes = [32, 8], strides = [1, 1]} : vector<32x32xbf16> to vector<32x8xbf16>
    %cst_20 = arith.constant dense<0.000000e+00> : vector<16x8xf32>
    %73 = tpu.matmul %71, %72, %cst_20 {dimension_numbers = #tpu.dot_dimension_numbers<[1], [0], [0], [1], [0, 0, 1, 1], [], []>} : vector<16x32xbf16>, vector<32x8xbf16>, vector<16x8xf32> -> vector<16x8xf32>
    %74 = tpu.reciprocal %70 {approx = true} : vector<16x1xf32> -> vector<16x1xf32>
    %75 = vector.broadcast %74 : vector<16x1xf32> to vector<16x8xf32>
    %76 = arith.mulf %73, %75 : vector<16x8xf32>
    %77 = vector.extract_strided_slice %0 {offsets = [0, 3], sizes = [16, 1], strides = [1, 1]} : vector<16x4xf32> to vector<16x1xf32>
    %78 = vector.extract_strided_slice %1 {offsets = [3, 0], sizes = [1, 32], strides = [1, 1]} : vector<4x32xf32> to vector<1x32xf32>
    %79 = vector.broadcast %77 : vector<16x1xf32> to vector<16x32xf32>
    %80 = vector.broadcast %78 : vector<1x32xf32> to vector<16x32xf32>
    %81 = arith.addf %79, %80 : vector<16x32xf32>
    %cst_21 = arith.constant 0.000000e+00 : f32
    %82 = vector.broadcast %cst_21 : f32 to vector<16x32xf32>
    %83 = arith.cmpf ogt, %81, %82 : vector<16x32xf32>
    %cst_22 = arith.constant 2.000000e-01 : f32
    %84 = vector.broadcast %cst_22 : f32 to vector<16x32xf32>
    %85 = arith.mulf %84, %81 : vector<16x32xf32>
    %86 = arith.select %83, %81, %85 : vector<16x32xi1>, vector<16x32xf32>
    %87 = arith.addf %86, %4 : vector<16x32xf32>
    %cst_23 = arith.constant dense<0xFF800000> : vector<16xf32>
    %88 = vector.multi_reduction <maximumf>, %87, %cst_23 [1] : vector<16x32xf32> to vector<16xf32>
    %89 = vector.shape_cast %88 : vector<16xf32> to vector<16x1xf32>
    %90 = vector.broadcast %89 : vector<16x1xf32> to vector<16x32xf32>
    %91 = arith.subf %87, %90 : vector<16x32xf32>
    %92 = math.exp %91 : vector<16x32xf32>
    %cst_24 = arith.constant dense<0.000000e+00> : vector<16xf32>
    %93 = vector.multi_reduction <add>, %92, %cst_24 [1] : vector<16x32xf32> to vector<16xf32>
    %94 = vector.shape_cast %93 : vector<16xf32> to vector<16x1xf32>
    %95 = arith.truncf %92 : vector<16x32xf32> to vector<16x32xbf16>
    %96 = vector.extract_strided_slice %2 {offsets = [0, 24], sizes = [32, 8], strides = [1, 1]} : vector<32x32xbf16> to vector<32x8xbf16>
    %cst_25 = arith.constant dense<0.000000e+00> : vector<16x8xf32>
    %97 = tpu.matmul %95, %96, %cst_25 {dimension_numbers = #tpu.dot_dimension_numbers<[1], [0], [0], [1], [0, 0, 1, 1], [], []>} : vector<16x32xbf16>, vector<32x8xbf16>, vector<16x8xf32> -> vector<16x8xf32>
    %98 = tpu.reciprocal %94 {approx = true} : vector<16x1xf32> -> vector<16x1xf32>
    %99 = vector.broadcast %98 : vector<16x1xf32> to vector<16x8xf32>
    %100 = arith.mulf %97, %99 : vector<16x8xf32>
    %101 = tpu.concatenate %28, %52, %76, %100 in 1 : vector<16x8xf32>, vector<16x8xf32>, vector<16x8xf32>, vector<16x8xf32> -> vector<16x32xf32>
    %c0_26 = arith.constant 0 : index
    %c0_27 = arith.constant 0 : index
    %102 = vector.load %arg5[%c0_26, %c0_27] : memref<1x32xf32, #tpu.memory_space<vmem>>, vector<1x32xf32>
    %103 = vector.broadcast %102 : vector<1x32xf32> to vector<16x32xf32>
    %104 = arith.mulf %101, %103 : vector<16x32xf32>
    %c0_28 = arith.constant 0 : index
    %c0_29 = arith.constant 0 : index
    %105 = vector.load %arg6[%c0_28, %c0_29] : memref<1x32xf32, #tpu.memory_space<vmem>>, vector<1x32xf32>
    %106 = vector.broadcast %105 : vector<1x32xf32> to vector<16x32xf32>
    %107 = arith.addf %104, %106 : vector<16x32xf32>
    %cst_30 = arith.constant 0.000000e+00 : f32
    %108 = vector.broadcast %cst_30 : f32 to vector<16x32xf32>
    %109 = arith.maximumf %107, %108 : vector<16x32xf32>
    %c0_31 = arith.constant 0 : index
    %c0_32 = arith.constant 0 : index
    %110 = vector.load %arg7[%c0_31, %c0_32] : memref<16x32xf32, #tpu.memory_space<vmem>>, vector<16x32xf32>
    tpu.vector_store %arg7[%c0_31, %c0_32], %109 {strides = array<i32>} : memref<16x32xf32, #tpu.memory_space<vmem>>, vector<16x32xf32>,
    return
  }
  func.func @transform_0(%arg0: i32) -> (i32, i32) {
    %c0_i32 = arith.constant 0 : i32
    %c0_i32_0 = arith.constant 0 : i32
    return %arg0, %c0_i32 : i32, i32
  }
  func.func @transform_1(%arg0: i32) -> (i32, i32) {
    %c0_i32 = arith.constant 0 : i32
    %c0_i32_0 = arith.constant 0 : i32
    %c0_i32_1 = arith.constant 0 : i32
    return %c0_i32, %c0_i32_0 : i32, i32
  }
  func.func @transform_2(%arg0: i32) -> (i32, i32) {
    %c0_i32 = arith.constant 0 : i32
    %c0_i32_0 = arith.constant 0 : i32
    %c0_i32_1 = arith.constant 0 : i32
    return %c0_i32, %c0_i32_0 : i32, i32
  }
  func.func @transform_3(%arg0: i32) -> (i32, i32) {
    %c0_i32 = arith.constant 0 : i32
    %c0_i32_0 = arith.constant 0 : i32
    return %arg0, %c0_i32 : i32, i32
  }
  func.func @transform_4(%arg0: i32) -> (i32, i32) {
    %c0_i32 = arith.constant 0 : i32
    %c0_i32_0 = arith.constant 0 : i32
    %c0_i32_1 = arith.constant 0 : i32
    return %c0_i32, %c0_i32_0 : i32, i32
  }
  func.func @transform_5(%arg0: i32) -> (i32, i32) {
    %c0_i32 = arith.constant 0 : i32
    %c0_i32_0 = arith.constant 0 : i32
    %c0_i32_1 = arith.constant 0 : i32
    return %c0_i32, %c0_i32_0 : i32, i32
  }
  func.func @transform_6(%arg0: i32) -> (i32, i32) {
    %c0_i32 = arith.constant 0 : i32
    %c0_i32_0 = arith.constant 0 : i32
    return %arg0, %c0_i32 : i32, i32
  }
}

module attributes {stable_mosaic.version = 11 : i64} {
  func.func @_pool_mlp_kernel(%arg0: i32, %arg1: memref<2x32xf32, #tpu.memory_space<vmem>>, %arg2: memref<32x32xf32, #tpu.memory_space<vmem>>, %arg3: memref<32x32xf32, #tpu.memory_space<vmem>>, %arg4: memref<1x32xf32, #tpu.memory_space<vmem>>, %arg5: memref<1x32xf32, #tpu.memory_space<vmem>>, %arg6: memref<1x32xf32, #tpu.memory_space<vmem>>, %arg7: memref<32x32xf32, #tpu.memory_space<vmem>>, %arg8: memref<1x32xf32, #tpu.memory_space<vmem>>, %arg9: memref<1x32xf32, #tpu.memory_space<vmem>>, %arg10: memref<1x32xf32, #tpu.memory_space<vmem>>, %arg11: memref<32x16xf32, #tpu.memory_space<vmem>>, %arg12: memref<1x16xf32, #tpu.memory_space<vmem>>, %arg13: memref<2x16xf32, #tpu.memory_space<vmem>>) attributes {dimension_semantics = [#tpu.dimension_semantics<arbitrary>], iteration_bounds = array<i64: 1>, scalar_prefetch = 0 : i64, scratch_operands = 0 : i64, tpu.core_type = #tpu.core_type<tc>, window_params = [{pipeline_mode = #tpu.pipeline_mode<synchronous>, transform_indices = @transform_0, window_bounds = array<i64: 2, 32>}, {pipeline_mode = #tpu.pipeline_mode<synchronous>, transform_indices = @transform_1, window_bounds = array<i64: 32, 32>}, {pipeline_mode = #tpu.pipeline_mode<synchronous>, transform_indices = @transform_2, window_bounds = array<i64: 32, 32>}, {pipeline_mode = #tpu.pipeline_mode<synchronous>, transform_indices = @transform_3, window_bounds = array<i64: 1, 32>}, {pipeline_mode = #tpu.pipeline_mode<synchronous>, transform_indices = @transform_4, window_bounds = array<i64: 1, 32>}, {pipeline_mode = #tpu.pipeline_mode<synchronous>, transform_indices = @transform_5, window_bounds = array<i64: 1, 32>}, {pipeline_mode = #tpu.pipeline_mode<synchronous>, transform_indices = @transform_6, window_bounds = array<i64: 32, 32>}, {pipeline_mode = #tpu.pipeline_mode<synchronous>, transform_indices = @transform_7, window_bounds = array<i64: 1, 32>}, {pipeline_mode = #tpu.pipeline_mode<synchronous>, transform_indices = @transform_8, window_bounds = array<i64: 1, 32>}, {pipeline_mode = #tpu.pipeline_mode<synchronous>, transform_indices = @transform_9, window_bounds = array<i64: 1, 32>}, {pipeline_mode = #tpu.pipeline_mode<synchronous>, transform_indices = @transform_10, window_bounds = array<i64: 32, 16>}, {pipeline_mode = #tpu.pipeline_mode<synchronous>, transform_indices = @transform_11, window_bounds = array<i64: 1, 16>}, {pipeline_mode = #tpu.pipeline_mode<synchronous>, transform_indices = @transform_12, window_bounds = array<i64: 2, 16>}]} {
    %c0 = arith.constant 0 : index
    %c0_0 = arith.constant 0 : index
    %0 = vector.load %arg1[%c0, %c0_0] : memref<2x32xf32, #tpu.memory_space<vmem>>, vector<2x32xf32>
    %c0_1 = arith.constant 0 : index
    %c0_2 = arith.constant 0 : index
    %1 = vector.load %arg2[%c0_1, %c0_2] : memref<32x32xf32, #tpu.memory_space<vmem>>, vector<32x32xf32>
    %cst = arith.constant dense<0.000000e+00> : vector<2x32xf32>
    %2 = tpu.matmul %0, %1, %cst {dimension_numbers = #tpu.dot_dimension_numbers<[1], [0], [0], [1], [0, 0, 1, 1], [], []>} : vector<2x32xf32>, vector<32x32xf32>, vector<2x32xf32> -> vector<2x32xf32>
    %c0_3 = arith.constant 0 : index
    %c0_4 = arith.constant 0 : index
    %3 = vector.load %arg3[%c0_3, %c0_4] : memref<32x32xf32, #tpu.memory_space<vmem>>, vector<32x32xf32>
    %cst_5 = arith.constant dense<0.000000e+00> : vector<2x32xf32>
    %4 = tpu.matmul %2, %3, %cst_5 {dimension_numbers = #tpu.dot_dimension_numbers<[1], [0], [0], [1], [0, 0, 1, 1], [], []>} : vector<2x32xf32>, vector<32x32xf32>, vector<2x32xf32> -> vector<2x32xf32>
    %c0_6 = arith.constant 0 : index
    %c0_7 = arith.constant 0 : index
    %5 = vector.load %arg4[%c0_6, %c0_7] : memref<1x32xf32, #tpu.memory_space<vmem>>, vector<1x32xf32>
    %6 = vector.broadcast %5 : vector<1x32xf32> to vector<2x32xf32>
    %7 = arith.addf %4, %6 : vector<2x32xf32>
    %cst_8 = arith.constant 0.000000e+00 : f32
    %8 = vector.broadcast %cst_8 : f32 to vector<2x32xf32>
    %9 = arith.cmpf ogt, %7, %8 : vector<2x32xf32>
    %cst_9 = arith.constant 2.000000e-01 : f32
    %10 = vector.broadcast %cst_9 : f32 to vector<2x32xf32>
    %11 = arith.mulf %10, %7 : vector<2x32xf32>
    %12 = arith.select %9, %7, %11 : vector<2x32xi1>, vector<2x32xf32>
    %c0_10 = arith.constant 0 : index
    %c0_11 = arith.constant 0 : index
    %13 = vector.load %arg5[%c0_10, %c0_11] : memref<1x32xf32, #tpu.memory_space<vmem>>, vector<1x32xf32>
    %14 = vector.broadcast %13 : vector<1x32xf32> to vector<2x32xf32>
    %15 = arith.mulf %12, %14 : vector<2x32xf32>
    %c0_12 = arith.constant 0 : index
    %c0_13 = arith.constant 0 : index
    %16 = vector.load %arg6[%c0_12, %c0_13] : memref<1x32xf32, #tpu.memory_space<vmem>>, vector<1x32xf32>
    %17 = vector.broadcast %16 : vector<1x32xf32> to vector<2x32xf32>
    %18 = arith.addf %15, %17 : vector<2x32xf32>
    %c0_14 = arith.constant 0 : index
    %c0_15 = arith.constant 0 : index
    %19 = vector.load %arg7[%c0_14, %c0_15] : memref<32x32xf32, #tpu.memory_space<vmem>>, vector<32x32xf32>
    %cst_16 = arith.constant dense<0.000000e+00> : vector<2x32xf32>
    %20 = tpu.matmul %18, %19, %cst_16 {dimension_numbers = #tpu.dot_dimension_numbers<[1], [0], [0], [1], [0, 0, 1, 1], [], []>} : vector<2x32xf32>, vector<32x32xf32>, vector<2x32xf32> -> vector<2x32xf32>
    %c0_17 = arith.constant 0 : index
    %c0_18 = arith.constant 0 : index
    %21 = vector.load %arg8[%c0_17, %c0_18] : memref<1x32xf32, #tpu.memory_space<vmem>>, vector<1x32xf32>
    %22 = vector.broadcast %21 : vector<1x32xf32> to vector<2x32xf32>
    %23 = arith.addf %20, %22 : vector<2x32xf32>
    %cst_19 = arith.constant 0.000000e+00 : f32
    %24 = vector.broadcast %cst_19 : f32 to vector<2x32xf32>
    %25 = arith.cmpf ogt, %23, %24 : vector<2x32xf32>
    %cst_20 = arith.constant 2.000000e-01 : f32
    %26 = vector.broadcast %cst_20 : f32 to vector<2x32xf32>
    %27 = arith.mulf %26, %23 : vector<2x32xf32>
    %28 = arith.select %25, %23, %27 : vector<2x32xi1>, vector<2x32xf32>
    %c0_21 = arith.constant 0 : index
    %c0_22 = arith.constant 0 : index
    %29 = vector.load %arg9[%c0_21, %c0_22] : memref<1x32xf32, #tpu.memory_space<vmem>>, vector<1x32xf32>
    %30 = vector.broadcast %29 : vector<1x32xf32> to vector<2x32xf32>
    %31 = arith.mulf %28, %30 : vector<2x32xf32>
    %c0_23 = arith.constant 0 : index
    %c0_24 = arith.constant 0 : index
    %32 = vector.load %arg10[%c0_23, %c0_24] : memref<1x32xf32, #tpu.memory_space<vmem>>, vector<1x32xf32>
    %33 = vector.broadcast %32 : vector<1x32xf32> to vector<2x32xf32>
    %34 = arith.addf %31, %33 : vector<2x32xf32>
    %c0_25 = arith.constant 0 : index
    %c0_26 = arith.constant 0 : index
    %35 = vector.load %arg11[%c0_25, %c0_26] : memref<32x16xf32, #tpu.memory_space<vmem>>, vector<32x16xf32>
    %cst_27 = arith.constant dense<0.000000e+00> : vector<2x16xf32>
    %36 = tpu.matmul %34, %35, %cst_27 {dimension_numbers = #tpu.dot_dimension_numbers<[1], [0], [0], [1], [0, 0, 1, 1], [], []>} : vector<2x32xf32>, vector<32x16xf32>, vector<2x16xf32> -> vector<2x16xf32>
    %c0_28 = arith.constant 0 : index
    %c0_29 = arith.constant 0 : index
    %37 = vector.load %arg12[%c0_28, %c0_29] : memref<1x16xf32, #tpu.memory_space<vmem>>, vector<1x16xf32>
    %38 = vector.broadcast %37 : vector<1x16xf32> to vector<2x16xf32>
    %39 = arith.addf %36, %38 : vector<2x16xf32>
    %cst_30 = arith.constant 0.000000e+00 : f32
    %40 = vector.broadcast %cst_30 : f32 to vector<2x16xf32>
    %41 = arith.cmpf ogt, %39, %40 : vector<2x16xf32>
    %cst_31 = arith.constant 2.000000e-01 : f32
    %42 = vector.broadcast %cst_31 : f32 to vector<2x16xf32>
    %43 = arith.mulf %42, %39 : vector<2x16xf32>
    %44 = arith.select %41, %39, %43 : vector<2x16xi1>, vector<2x16xf32>
    %c0_32 = arith.constant 0 : index
    %c0_33 = arith.constant 0 : index
    %45 = vector.load %arg13[%c0_32, %c0_33] : memref<2x16xf32, #tpu.memory_space<vmem>>, vector<2x16xf32>
    tpu.vector_store %arg13[%c0_32, %c0_33], %44 {strides = array<i32>} : memref<2x16xf32, #tpu.memory_space<vmem>>, vector<2x16xf32>,
    return
  }
  func.func @transform_0(%arg0: i32) -> (i32, i32) {
    %c0_i32 = arith.constant 0 : i32
    %c0_i32_0 = arith.constant 0 : i32
    %c0_i32_1 = arith.constant 0 : i32
    return %c0_i32, %c0_i32_0 : i32, i32
  }
  func.func @transform_1(%arg0: i32) -> (i32, i32) {
    %c0_i32 = arith.constant 0 : i32
    %c0_i32_0 = arith.constant 0 : i32
    %c0_i32_1 = arith.constant 0 : i32
    return %c0_i32, %c0_i32_0 : i32, i32
  }
  func.func @transform_2(%arg0: i32) -> (i32, i32) {
    %c0_i32 = arith.constant 0 : i32
    %c0_i32_0 = arith.constant 0 : i32
    %c0_i32_1 = arith.constant 0 : i32
    return %c0_i32, %c0_i32_0 : i32, i32
  }
  func.func @transform_3(%arg0: i32) -> (i32, i32) {
    %c0_i32 = arith.constant 0 : i32
    %c0_i32_0 = arith.constant 0 : i32
    %c0_i32_1 = arith.constant 0 : i32
    return %c0_i32, %c0_i32_0 : i32, i32
  }
  func.func @transform_4(%arg0: i32) -> (i32, i32) {
    %c0_i32 = arith.constant 0 : i32
    %c0_i32_0 = arith.constant 0 : i32
    %c0_i32_1 = arith.constant 0 : i32
    return %c0_i32, %c0_i32_0 : i32, i32
  }
  func.func @transform_5(%arg0: i32) -> (i32, i32) {
    %c0_i32 = arith.constant 0 : i32
    %c0_i32_0 = arith.constant 0 : i32
    %c0_i32_1 = arith.constant 0 : i32
    return %c0_i32, %c0_i32_0 : i32, i32
  }
  func.func @transform_6(%arg0: i32) -> (i32, i32) {
    %c0_i32 = arith.constant 0 : i32
    %c0_i32_0 = arith.constant 0 : i32
    %c0_i32_1 = arith.constant 0 : i32
    return %c0_i32, %c0_i32_0 : i32, i32
  }
  func.func @transform_7(%arg0: i32) -> (i32, i32) {
    %c0_i32 = arith.constant 0 : i32
    %c0_i32_0 = arith.constant 0 : i32
    %c0_i32_1 = arith.constant 0 : i32
    return %c0_i32, %c0_i32_0 : i32, i32
  }
  func.func @transform_8(%arg0: i32) -> (i32, i32) {
    %c0_i32 = arith.constant 0 : i32
    %c0_i32_0 = arith.constant 0 : i32
    %c0_i32_1 = arith.constant 0 : i32
    return %c0_i32, %c0_i32_0 : i32, i32
  }
  func.func @transform_9(%arg0: i32) -> (i32, i32) {
    %c0_i32 = arith.constant 0 : i32
    %c0_i32_0 = arith.constant 0 : i32
    %c0_i32_1 = arith.constant 0 : i32
    return %c0_i32, %c0_i32_0 : i32, i32
  }
  func.func @transform_10(%arg0: i32) -> (i32, i32) {
    %c0_i32 = arith.constant 0 : i32
    %c0_i32_0 = arith.constant 0 : i32
    %c0_i32_1 = arith.constant 0 : i32
    return %c0_i32, %c0_i32_0 : i32, i32
  }
  func.func @transform_11(%arg0: i32) -> (i32, i32) {
    %c0_i32 = arith.constant 0 : i32
    %c0_i32_0 = arith.constant 0 : i32
    %c0_i32_1 = arith.constant 0 : i32
    return %c0_i32, %c0_i32_0 : i32, i32
  }
  func.func @transform_12(%arg0: i32) -> (i32, i32) {
    %c0_i32 = arith.constant 0 : i32
    %c0_i32_0 = arith.constant 0 : i32
    %c0_i32_1 = arith.constant 0 : i32
    return %c0_i32, %c0_i32_0 : i32, i32
  }
}

</mosaic_0001>

<bundles_post_ra>
// kernel: gat_forward.5
= control target key start
LH: loop header
LB: loop body
LE: loop exit
PB: predicated region body
PF: predicated region fallthrough
CT: control target
= control target key end

     0   :  { %s443_s15 = smov 0   ;;  %s478_s0 = inlined_call_operand.vmem [shape: f32[32,16], index: 0, kind: input, shape index: {}]   ;;  %s479_s1 = inlined_call_operand.vmem [shape: bf16[16,32], index: 1, kind: input, shape index: {}]   ;;  %s480_s2 = inlined_call_operand.vmem [shape: f32[32,8], index: 2, kind: input, shape index: {}]   ;;  %s481_s3 = inlined_call_operand.vmem [shape: bf16[32,32], index: 3, kind: output, shape index: {0}]   ;;  %s482_s4 = inlined_call_operand.vmem [shape: f32[32,8], index: 4, kind: output, shape index: {1}]  }
   0x1 LB: > { %s377_s16 = sadd.s32 4294967295, %s416_s15   ;;  %p381_p0 = scmp.ge.s32.totalorder %s416_s15, 1  ;;  %s416_s15 = sphi %s443_s15, %s15_s15  }
   0x2   : > { %p166_p1 = scmp.lt.s32.totalorder %s416_s15, 3 }
   0x4   : > { %p167_p2 = pnand %p381_p0, %p166_p1 }
   0x5   : > { %s382_s19 = sshll.u32 (!%p167_p2), %s377_s16, 1 }
   0x6   : > { %170 = sbr.rel (%p167_p2) target bundleno = 284 (0x11c), region = 32  ;;  %p198_p3 = scmp.lt.s32.totalorder (!%p167_p2), %s382_s19, 3 }
   0xb   : > { %v397_v0 = vld [vmem:[%s479_s1] sm:$0xff]  ;;  %v248_v1 = vld [vmem:[%s480_s2 + $0x18] sm:$0xff]  ;;  %v247_v2 = vld [vmem:[%s480_s2 + $0x10] sm:$0xff]  ;;  %s484_s19 = smov (!%p198_p3, %s382_s19), 3  ;;  %vm227_vm0 = vcmask 130048   ;;  %vm249_vm1 = vcmask 261120  }
   0xc   : > { %268 = vmatpush.msra.mxu1 %v248_v1  ;;  %398 = vmatpush.msra.mxu2 %v248_v1  ;;  %v246_v3 = vld [vmem:[%s480_s2 + $0x8] sm:$0xff]  ;;  %s383_s26 = sshll.u32 %s484_s19, 3  ;;  %v245_v7 = vld [vmem:[%s480_s2] sm:$0xff]  ;;  %s385_s6 = sshll.u32 %s484_s19, 2  ;;  %vm284_vm2 = vcmask 257024   ;;  %vm279_vm3 = vcmask 64512  }
   0xd   : > { %238 = vmatpush.bf16.msra.mxu0 %v397_v0  ;;  %s201_s29 = scalar_lea.vmem %s478_s0, %s383_s26  ;;  %s207_s9 = scalar_lea.vmem %s481_s3, %s385_s6 }
   0xe   : > { %269 = vmatpush.msra.mxu1 %v247_v2  ;;  %399 = vmatpush.msra.mxu2 %v247_v2  ;;  %v216_v4 = vld [vmem:[%s201_s29] sm:$0xff]  ;;  %v217_v5 = vld [vmem:[%s201_s29 + $0x8] sm:$0xff]  ;;  %s213_s12 = scalar_lea.vmem %s482_s4, %s383_s26 }
   0xf   : > { %v218_v6 = vpack.c.bf16 %v217_v5, %v216_v4 }
  0x10   : > { %270 = vmatpush.msra.mxu1 %v246_v3  ;;  %400 = vmatpush.msra.mxu2 %v246_v3 }
  0x11   : > { %392 = vmatmul.msk.bf16.vlgmr.msra.gmra.mxu0 %vm227_vm0, %v218_v6 }
  0x12   : > { %271 = vmatpush.msra.mxu1 %v245_v7  ;;  %401 = vmatpush.msra.mxu2 %v245_v7 }
  0x8e   : > { %v240_v8 = vpop.f32.mrf.mxu0 }
  0x8f   : > { %v282_v9 = vpack.c.bf16 %v240_v8, %v240_v8  ;;  %393 = vmatmul.msk.f32.vlgmr.msra.gmra.mxu1 %vm249_vm1, %v240_v8 }
  0x91   : > { %285 = vst.msk [vmem:[%s207_s9] sm:$0xf] %vm284_vm2, %v282_v9 }
  0x96   : > { %v242_v10 = vpop.f32.mrf.mxu0 }
  0x97   : > { %v283_v11 = vpack.c.bf16 %v242_v10, %v242_v10  ;;  %394 = vmatmul.msk.f32.vlgmr.msra.gmra.mxu2 %vm249_vm1, %v242_v10 }
  0x99   : > { %286 = vst.msk [vmem:[%s207_s9 + $0x4] sm:$0xf] %vm284_vm2, %v283_v11 }
 0x10c   : > { %v273_v12 = vpop.f32.mrf.mxu1 }
 0x10d   : > { %280 = vst.msk [vmem:[%s213_s12] sm:$0xff] %vm279_vm3, %v273_v12 }
 0x11a   : > { %v276_v13 = vpop.f32.mrf.mxu2 }
 0x11b   : > { %281 = vst.msk [vmem:[%s213_s12 + $0x8] sm:$0xff] %vm279_vm3, %v276_v13 }
 0x11c PF: > { %s15_s15 = sadd.s32 1, %s416_s15  }
 0x11d   : > { %p12_p4 = scmp.ge.s32.totalorder %s15_s15, 4  }
 0x11f   :  { %14 = sbr.rel (!%p12_p4) target bundleno = 1 (0x1), region = 74 }

// kernel: gat_forward.7
= control target key start
LH: loop header
LB: loop body
LE: loop exit
PB: predicated region body
PF: predicated region fallthrough
CT: control target
= control target key end

     0   :  { %s451_s15 = smov 0   ;;  %s489_s0 = inlined_call_operand.vmem [shape: f32[32,32], index: 0, kind: input, shape index: {}]   ;;  %s490_s1 = inlined_call_operand.vmem [shape: bf16[32,32], index: 1, kind: input, shape index: {}]   ;;  %s491_s2 = inlined_call_operand.vmem [shape: f32[32,8], index: 2, kind: input, shape index: {}]   ;;  %s492_s3 = inlined_call_operand.vmem [shape: bf16[32,32], index: 3, kind: output, shape index: {0}]   ;;  %s493_s4 = inlined_call_operand.vmem [shape: f32[32,8], index: 4, kind: output, shape index: {1}]  }
   0x1 LB: > { %s384_s16 = sadd.s32 4294967295, %s424_s15   ;;  %p388_p0 = scmp.ge.s32.totalorder %s424_s15, 1  ;;  %s424_s15 = sphi %s451_s15, %s15_s15  }
   0x2   : > { %p166_p1 = scmp.lt.s32.totalorder %s424_s15, 3 }
   0x4   : > { %p167_p2 = pnand %p388_p0, %p166_p1 }
   0x5   : > { %s389_s19 = sshll.u32 (!%p167_p2), %s384_s16, 1 }
   0x6   : > { %170 = sbr.rel (%p167_p2) target bundleno = 280 (0x118), region = 32  ;;  %p198_p3 = scmp.lt.s32.totalorder (!%p167_p2), %s389_s19, 3 }
   0xb   : > { %v409_v0 = vld [vmem:[%s490_s1 + $0x8] sm:$0xff]  ;;  %v256_v1 = vld [vmem:[%s491_s2 + $0x18] sm:$0xff]  ;;  %v255_v2 = vld [vmem:[%s491_s2 + $0x10] sm:$0xff]  ;;  %s495_s19 = smov (!%p198_p3, %s389_s19), 3  ;;  %vm235_vm0 = vcmask 261120   ;;  %vm291_vm1 = vcmask 257024  }
   0xc   : > { %275 = vmatpush.msra.mxu1 %v256_v1  ;;  %245 = vmatpush.bf16.msra.mxu0 %v409_v0  ;;  %v408_v3 = vld [vmem:[%s490_s1] sm:$0xff]  ;;  %v254_v4 = vld [vmem:[%s491_s2 + $0x8] sm:$0xff]  ;;  %s390_s28 = sshll.u32 %s495_s19, 3  ;;  %s392_s8 = sshll.u32 %s495_s19, 2  ;;  %vm286_vm2 = vcmask 64512  }
   0xd   : > { %s201_s5 = scalar_lea.vmem %s489_s0, %s390_s28  ;;  %v253_v8 = vld [vmem:[%s491_s2] sm:$0xff]  ;;  %s207_s11 = scalar_lea.vmem %s492_s3, %s392_s8 }
   0xe   : > { %276 = vmatpush.msra.mxu1 %v255_v2  ;;  %v216_v5 = vld [vmem:[%s201_s5] sm:$0xff]  ;;  %v217_v6 = vld [vmem:[%s201_s5 + $0x8] sm:$0xff]  ;;  %s213_s14 = scalar_lea.vmem %s493_s4, %s390_s28 }
   0xf   : > { %v218_v7 = vpack.c.bf16 %v217_v6, %v216_v5 }
  0x10   : > { %277 = vmatpush.msra.mxu1 %v254_v4  ;;  %246 = vmatpush.bf16.msra.mxu0 %v408_v3 }
  0x12   : > { %278 = vmatpush.msra.mxu1 %v253_v8 }
  0x13   : > { %403 = vmatmul.msk.bf16.vlgmr.msra.gmra.mxu0 %vm235_vm0, %v218_v7 }
  0x90   : > { %v248_v9 = vpop.f32.mrf.mxu0 }
  0x91   : > { %v289_v10 = vpack.c.bf16 %v248_v9, %v248_v9  ;;  %404 = vmatmul.msk.f32.vlgmr.msra.gmra.mxu1 %vm235_vm0, %v248_v9 }
  0x93   : > { %292 = vst.msk [vmem:[%s207_s11] sm:$0xf] %vm291_vm1, %v289_v10 }
  0x98   : > { %v250_v11 = vpop.f32.mrf.mxu0 }
  0x99   : > { %v290_v12 = vpack.c.bf16 %v250_v11, %v250_v11  ;;  %405 = vmatmul.msk.f32.gmra.mxu1 %vm235_vm0, %v250_v11 }
  0x9b   : > { %293 = vst.msk [vmem:[%s207_s11 + $0x4] sm:$0xf] %vm291_vm1, %v290_v12 }
 0x10e   : > { %v280_v13 = vpop.f32.mrf.mxu1 }
 0x10f   : > { %287 = vst.msk [vmem:[%s213_s14] sm:$0xff] %vm286_vm2, %v280_v13 }
 0x116   : > { %v283_v14 = vpop.f32.mrf.mxu1 }
 0x117   : > { %288 = vst.msk [vmem:[%s213_s14 + $0x8] sm:$0xff] %vm286_vm2, %v283_v14 }
 0x118 PF: > { %s15_s15 = sadd.s32 1, %s424_s15  }
 0x119   : > { %p12_p4 = scmp.ge.s32.totalorder %s15_s15, 4  }
 0x11b   :  { %14 = sbr.rel (!%p12_p4) target bundleno = 1 (0x1), region = 74 }

// kernel: gat_forward.9
= control target key start
LH: loop header
LB: loop body
LE: loop exit
PB: predicated region body
PF: predicated region fallthrough
CT: control target
= control target key end

     0   :  { %vm47_vm0 = vcmask 261120   ;;  %s394_s0 = inlined_call_operand.vmem [shape: f32[2,32], index: 0, kind: input, shape index: {}]   ;;  %s395_s1 = inlined_call_operand.vmem [shape: f32[32,32], index: 1, kind: input, shape index: {}]   ;;  %s396_s2 = inlined_call_operand.vmem [shape: f32[32,32], index: 2, kind: input, shape index: {}]   ;;  %s397_s3 = inlined_call_operand.vmem [shape: f32[1,32], index: 3, kind: input, shape index: {}]   ;;  %s398_s4 = inlined_call_operand.vmem [shape: f32[1,32], index: 4, kind: input, shape index: {}]   ;;  %s399_s5 = inlined_call_operand.vmem [shape: f32[1,32], index: 5, kind: input, shape index: {}]   ;;  %s400_s6 = inlined_call_operand.vmem [shape: f32[32,32], index: 6, kind: input, shape index: {}]   ;;  %s401_s7 = inlined_call_operand.vmem [shape: f32[1,32], index: 7, kind: input, shape index: {}]   ;;  %s402_s8 = inlined_call_operand.vmem [shape: f32[1,32], index: 8, kind: input, shape index: {}]   ;;  %s403_s9 = inlined_call_operand.vmem [shape: f32[1,32], index: 9, kind: input, shape index: {}]   ;;  %s404_s10 = inlined_call_operand.vmem [shape: f32[32,16], index: 10, kind: input, shape index: {}]   ;;  %s405_s11 = inlined_call_operand.vmem [shape: f32[1,16], index: 11, kind: input, shape index: {}]   ;;  %s406_s12 = inlined_call_operand.hbm [shape: f32[2,16], index: 12, kind: output, shape index: {}]  }
   0x1   :  { %v46_v0 = vld [vmem:[%s395_s1 + $0x18] sm:$0xff]  ;;  %v45_v1 = vld [vmem:[%s395_s1 + $0x10] sm:$0xff]  ;;  %v44_v2 = vld [vmem:[%s395_s1 + $0x8] sm:$0xff] }
   0x2   :  { %63 = vmatpush.msra.mxu0 %v46_v0  ;;  %v74_v3 = vld [vmem:[%s396_s2 + $0x18] sm:$0xff]  ;;  %v43_v4 = vld [vmem:[%s395_s1] sm:$0xff]  ;;  %v73_v5 = vld [vmem:[%s396_s2 + $0x10] sm:$0xff] }
   0x3   :  { %94 = vmatpush.msra.mxu1 %v74_v3  ;;  %v72_v6 = vld [vmem:[%s396_s2 + $0x8] sm:$0xff]  ;;  %v42_v7 = vld [vmem:[%s394_s0] sm:$0x3] }
   0x4   :  { %64 = vmatpush.msra.mxu0 %v45_v1 }
   0x5   :  { %95 = vmatpush.msra.mxu1 %v73_v5 }
   0x6   :  { %65 = vmatpush.msra.mxu0 %v44_v2 }
   0x7   :  { %17 = vsyncpa [#allocation3], 0  ;;  %96 = vmatpush.msra.mxu1 %v72_v6  ;;  %v71_v8 = vld [vmem:[%s396_s2] sm:$0xff]  ;;  %v118_v10 = vld [vmem:[%s400_s6 + $0x18] sm:$0xff]  ;;  %s202_s25 = sshll.u32 %s406_s12, 4  ;;  %vm193_vm4 = vcmask 123904   ;;  %s203_s25 = int_to_ptr.hbm [resolvable:$true] %s202_s25 }
   0x8   :  { %66 = vmatpush.msra.mxu0 %v43_v4  ;;  %138 = vmatpush.msra.mxu2 %v118_v10  ;;  %v117_v11 = vld [vmem:[%s400_s6 + $0x10] sm:$0xff]  ;;  %v116_v12 = vld [vmem:[%s400_s6 + $0x8] sm:$0xff]  ;;  %v115_v13 = vld [vmem:[%s400_s6] sm:$0xff] }
   0x9   :  { %211 = vmatmul.msk.f32.vlgmr.msra.gmra.mxu0 %vm47_vm0, %v42_v7  ;;  %97 = vmatpush.msra.mxu1 %v71_v8  ;;  %v216_v14 = vld [vmem:[%s397_s3] ss:$0 sm:$0xff]  ;;  %v162_v23 = vld [vmem:[%s404_s10 + $0x18] sm:$0xff]  ;;  %v161_v24 = vld [vmem:[%s404_s10 + $0x10] sm:$0xff] }
   0xa   :  { %139 = vmatpush.msra.mxu2 %v117_v11  ;;  %v217_v17 = vld [vmem:[%s398_s4] ss:$0 sm:$0xff]  ;;  %182 = vmatpush.msra.mxu3 %v162_v23  ;;  %v160_v25 = vld [vmem:[%s404_s10 + $0x8] sm:$0xff] }
   0xb   :  { %v218_v19 = vld [vmem:[%s399_s5] ss:$0 sm:$0xff] }
   0xc   :  { %140 = vmatpush.msra.mxu2 %v116_v12  ;;  %183 = vmatpush.msra.mxu3 %v161_v24  ;;  %v159_v26 = vld [vmem:[%s404_s10] sm:$0xff] }
   0xd   :  { %v219_v27 = vld [vmem:[%s401_s7] ss:$0 sm:$0xff]  ;;  %s249_s7 = smov [#allocation2]  }
   0xe   :  { %141 = vmatpush.msra.mxu2 %v115_v13  ;;  %184 = vmatpush.msra.mxu3 %v160_v25  ;;  %v220_v30 = vld [vmem:[%s402_s8] ss:$0 sm:$0xff]  ;;  %s200_s23 = sshll.u32 %s249_s7, 4  ;;  %s201_s23 = int_to_ptr.vmem [resolvable:$true] %s200_s23 }
   0xf   :  { %v221_v32 = vld [vmem:[%s403_s9] ss:$0 sm:$0xff] }
  0x10   :  { %185 = vmatpush.msra.mxu3 %v159_v26  ;;  %v222_v36 = vld [vmem:[%s405_s11] ss:$0 sm:$0xff] }
  0x86   :  { %v68_v9 = vpop.f32.mrf.mxu0 }
  0x87   :  { %212 = vmatmul.msk.f32.vlgmr.msra.gmra.mxu1 %vm47_vm0, %v68_v9 }
 0x104   :  { %v99_v15 = vpop.f32.mrf.mxu1 }
 0x105   :  { %v100_v16 = vadd.f32 %v216_v14, %v99_v15 }
 0x107   :  { %vm102_vm1 = vcmp.gt.f32.partialorder %v100_v16, 0.0  ;;  %v103_v18 = vmul.f32 0.2, %v100_v16 }
 0x109   :  { %v104_v20 = vsel %vm102_vm1, %v100_v16, %v103_v18 }
 0x10a   :  { %v109_v21 = vmul.f32 %v217_v17, %v104_v20 }
 0x10c   :  { %v114_v22 = vadd.f32 %v218_v19, %v109_v21 }
 0x10e   :  { %213 = vmatmul.msk.f32.vlgmr.msra.gmra.mxu2 %vm47_vm0, %v114_v22 }
 0x191   :  { %v143_v28 = vpop.f32.mrf.mxu2 }
 0x192   :  { %v144_v29 = vadd.f32 %v219_v27, %v143_v28 }
 0x194   :  { %vm146_vm2 = vcmp.gt.f32.partialorder %v144_v29, 0.0  ;;  %v147_v31 = vmul.f32 0.2, %v144_v29 }
 0x196   :  { %v148_v33 = vsel %vm146_vm2, %v144_v29, %v147_v31 }
 0x197   :  { %v153_v34 = vmul.f32 %v220_v30, %v148_v33 }
 0x199   :  { %v158_v35 = vadd.f32 %v221_v32, %v153_v34 }
 0x19b   :  { %214 = vmatmul.msk.f32.vlgmr.msra.gmra.mxu3 %vm47_vm0, %v158_v35 }
 0x21e   :  { %v187_v37 = vpop.f32.mrf.mxu3 }
 0x21f   :  { %v188_v38 = vadd.f32 %v222_v36, %v187_v37 }
 0x221   :  { %vm190_vm3 = vcmp.gt.f32.partialorder %v188_v38, 0.0  ;;  %v191_v39 = vmul.f32 0.2, %v188_v38 }
 0x223   :  { %v192_v40 = vsel %vm190_vm3, %v188_v38, %v191_v39 }
 0x224   :  { %194 = vst.msk [vmem:[#allocation2] sm:$0x3] %vm193_vm4, %v192_v40 }
 0x225   :  { %205 = dma.vmem_to_hbm [thread:$0]  %s201_s23, 32, %s203_s25, [#allocation3]  }
 0x226   :  { %247 = dma.done.wait [#allocation3], 32  }
 0x227   :  { %248 = vsyncadd [#allocation3], 4294967264 }
 0x228   :  { %210 = vsyncpa [#allocation3], 1 }

// kernel: gat_forward.6
= control target key start
LH: loop header
LB: loop body
LE: loop exit
PB: predicated region body
PF: predicated region fallthrough
CT: control target
= control target key end

     0   :  { %s817_s21 = smov 0   ;;  %s930_s0 = inlined_call_operand.vmem [shape: f32[32,4], index: 0, kind: input, shape index: {}]   ;;  %s931_s1 = inlined_call_operand.vmem [shape: f32[4,32], index: 1, kind: input, shape index: {}]   ;;  %s932_s2 = inlined_call_operand.vmem [shape: bf16[32,32], index: 2, kind: input, shape index: {}]   ;;  %s933_s3 = inlined_call_operand.vmem [shape: bf16[32,32], index: 3, kind: input, shape index: {}]   ;;  %s934_s4 = inlined_call_operand.vmem [shape: f32[1,32], index: 4, kind: input, shape index: {}]   ;;  %s935_s5 = inlined_call_operand.vmem [shape: f32[1,32], index: 5, kind: input, shape index: {}]   ;;  %s936_s6 = inlined_call_operand.vmem [shape: f32[32,32], index: 6, kind: output, shape index: {}]  }
   0x1 LB: > { %s675_s22 = sadd.s32 4294967295, %s770_s21   ;;  %p679_p0 = scmp.ge.s32.totalorder %s770_s21, 1  ;;  %s770_s21 = sphi %s817_s21, %s16_s21  }
   0x2   : > { %p224_p1 = scmp.lt.s32.totalorder %s770_s21, 3 }
   0x4   : > { %p225_p2 = pnand %p679_p0, %p224_p1 }
   0x5   : > { %s680_s23 = sshll.u32 (!%p225_p2), %s675_s22, 1  ;;  %s776_s8 = smov (!%p225_p2), 112  }
   0x6   : > { %228 = sbr.rel (%p225_p2) target bundleno = 564 (0x234), region = 44  ;;  %p260_p3 = scmp.lt.s32.totalorder (!%p225_p2), %s680_s23, 3 }
   0x7   : > { %s777_s9 = smov (!%p225_p2), 104   ;;  %s778_s16 = smov (!%p225_p2), 120  }
   0x8   : > { %s779_s17 = smov (!%p225_p2), 16   ;;  %s780_s18 = smov (!%p225_p2), 24  }
   0x9   : > { %s781_s19 = smov (!%p225_p2), 8  }
   0xb   : > { %v828_v0 = vld [vmem:[%s932_s2 + $0x8] sm:$0xff]  ;;  %v772_v1 = vmov 3   ;;  %v773_v2 = vmov 2   ;;  %v774_v3 = vmov 1   ;;  %s938_s23 = smov (!%p260_p3, %s680_s23), 3  ;;  %v836_v4 = vld [vmem:[%s932_s2] sm:$0xff] }
   0xc   : > { %725 = vset.pattern.permute.xlu1 %v772_v1  ;;  %724 = vset.pattern.permute.xlu0 %v773_v2  ;;  %s681_s28 = sshll.u32 %s938_s23, 3  ;;  %v775_v7 = vmov 0   ;;  %s683_s10 = sshll.u32 %s938_s23, 2  ;;  %v853_v8 = vld [vmem:[%s931_s1] sm:$0xf]  ;;  %vm310_vm2 = vcmask 261120  }
   0xd   : > { %726 = vset.pattern.permute.xlu2 %v774_v3  ;;  %351 = vmatpush.bf16.msra.mxu0 %v828_v0  ;;  %s263_s7 = scalar_lea.vmem %s930_s0, %s681_s28  ;;  %s269_s15 = scalar_lea.vmem %s933_s3, %s683_s10  ;;  %v501_v10 = vperm.slane %v853_v8, 3  ;;  %v436_v11 = vperm.slane %v853_v8, 2  ;;  %v371_v20 = vperm.slane %v853_v8, 1  ;;  %v299_v54 = vperm.slane %v853_v8, 0 }
   0xe   : > { %v278_v5 = vld [vmem:[%s263_s7] sm:$0xff]  ;;  %v279_v6 = vld [vmem:[%s263_s7 + $0x8] sm:$0xff]  ;;  %vm582_vm9 = vcmask 64512   ;;  %vm585_vm10 = vcmask 130048   ;;  %vm588_vm11 = vcmask 195584   ;;  %s275_s29 = scalar_lea.vmem %s936_s6, %s681_s28 }
   0xf   : > { %494 = vperm.xlu1 %725, %v278_v5   ;;  %429 = vperm.xlu0 %724, %v278_v5   ;;  %v703_v12 = vld [vmem:[%s269_s15] sm:$0xff]  }
  0x10   : > { %364 = vperm.xlu2 %726, %v278_v5   ;;  %v860_v17 = vunpack.c.l.bf16 %v703_v12  ;;  %v705_v36 = vunpack.c.h.bf16 %v703_v12 }
  0x11   : > { %352 = vmatpush.bf16.msra.mxu0 %v836_v4 }
  0x17   : > { %498 = vperm.xlu1 %725, %v279_v6   ;;  %433 = vperm.xlu0 %724, %v279_v6  }
  0x18   : > { %368 = vperm.xlu2 %726, %v279_v6  }
  0x1f   : > { %727 = vset.pattern.permute.xlu0 %v775_v7  ;;  %728 = vset.pattern.permute.xlu1 %v775_v7 }
  0x20   : > { %291 = vperm.xlu0 %727, %v278_v5   ;;  %296 = vperm.xlu1 %728, %v279_v6  }
  0x21   : > { %468 = vrot.lane.b32.xlu2 %v828_v0, %s776_s8 }
  0x28   : > { %533 = vrot.lane.b32.xlu0 %v828_v0, %s777_s9  ;;  %466 = vrot.lane.b32.xlu1 %v836_v4, %s776_s8 }
  0x29   : > { %729 = vset.pattern.permute.xlu0 %v772_v1 }
  0x6a   : > { %v365_v9 = vpop.permute.xlu2 %364 }
  0x6b   : > { %v372_v26 = vadd.f32 %v371_v20, %v365_v9 }
  0x6d   : > { %v376_v37 = vmul.f32 0.2, %v372_v26  ;;  %vm374_vm5 = vcmp.gt.f32.partialorder %v372_v26, 0.0 }
  0x6f   : > { %v378_v45 = vsel %vm374_vm5, %v372_v26, %v376_v37 }
  0x70   : > { %v380_v47 = vadd.f32 %v860_v17, %v378_v45 }
  0x72   : > { %v369_v23 = vpop.permute.xlu2 %368  ;;  %v382_v49 = vsel %vm310_vm2, %v380_v47, -inf }
  0x73   : > { %v373_v31 = vadd.f32 %v371_v20, %v369_v23 }
  0x75   : > { %v377_v38 = vmul.f32 0.2, %v373_v31  ;;  %vm375_vm6 = vcmp.gt.f32.partialorder %v373_v31, 0.0 }
  0x77   : > { %v379_v46 = vsel %vm375_vm6, %v373_v31, %v377_v38 }
  0x78   : > { %v381_v48 = vadd.f32 %v705_v36, %v379_v46 }
  0x7a   : > { %v385_v50 = vsel %vm310_vm2, %v381_v48, -inf }
  0x7b   : > { %v469_v51 = vpop.permute.xlu2 %468 }
  0x7c   : > { %481 = vmatpush.bf16.msra.mxu2 %v469_v51 }
  0x81   : > { %v495_v13 = vpop.permute.xlu1 %494  ;;  %v430_v14 = vpop.permute.xlu0 %429 }
  0x82   : > { %v502_v15 = vadd.f32 %v501_v10, %v495_v13  ;;  %v437_v16 = vadd.f32 %v436_v11, %v430_v14 }
  0x84   : > { %vm504_vm0 = vcmp.gt.f32.partialorder %v502_v15, 0.0  ;;  %v506_v18 = vmul.f32 0.2, %v502_v15  ;;  %vm439_vm1 = vcmp.gt.f32.partialorder %v437_v16, 0.0  ;;  %v441_v19 = vmul.f32 0.2, %v437_v16 }
  0x86   : > { %v508_v21 = vsel %vm504_vm0, %v502_v15, %v506_v18  ;;  %v443_v22 = vsel %vm439_vm1, %v437_v16, %v441_v19 }
  0x87   : > { %v864_v24 = vadd.f32 %v860_v17, %v508_v21  ;;  %v867_v25 = vadd.f32 %v860_v17, %v443_v22 }
  0x89   : > { %v499_v27 = vpop.permute.xlu1 %498  ;;  %v434_v28 = vpop.permute.xlu0 %433  ;;  %v512_v29 = vsel %vm310_vm2, %v864_v24, -inf  ;;  %v447_v30 = vsel %vm310_vm2, %v867_v25, -inf }
  0x8a   : > { %v503_v32 = vadd.f32 %v501_v10, %v499_v27  ;;  %v438_v33 = vadd.f32 %v436_v11, %v434_v28  ;;  %513 = vmax.xlane.f32.xlu0 %v512_v29  ;;  %448 = vmax.xlane.f32.xlu2 %v447_v30 }
  0x8c   : > { %vm505_vm3 = vcmp.gt.f32.partialorder %v503_v32, 0.0  ;;  %v507_v34 = vmul.f32 0.2, %v503_v32  ;;  %vm440_vm4 = vcmp.gt.f32.partialorder %v438_v33, 0.0  ;;  %v442_v35 = vmul.f32 0.2, %v438_v33 }
  0x8e   : > { %v509_v39 = vsel %vm505_vm3, %v503_v32, %v507_v34  ;;  %v444_v40 = vsel %vm440_vm4, %v438_v33, %v442_v35 }
  0x8f   : > { %v511_v41 = vadd.f32 %v705_v36, %v509_v39  ;;  %v446_v42 = vadd.f32 %v705_v36, %v444_v40 }
  0x91   : > { %v515_v43 = vsel %vm310_vm2, %v511_v41, -inf  ;;  %v450_v44 = vsel %vm310_vm2, %v446_v42, -inf }
  0x92   : > { %516 = vmax.xlane.f32.xlu2 %v515_v43  ;;  %451 = vmax.xlane.f32.xlu1 %v450_v44  ;;  %v297_v52 = vpop.permute.xlu1 %296  ;;  %v292_v55 = vpop.permute.xlu0 %291 }
  0x93   : > { %v300_v56 = vadd.f32 %v299_v54, %v292_v55  ;;  %v301_v62 = vadd.f32 %v299_v54, %v297_v52 }
  0x95   : > { %v304_v57 = vmul.f32 0.2, %v300_v56  ;;  %vm302_vm7 = vcmp.gt.f32.partialorder %v300_v56, 0.0  ;;  %v305_v63 = vmul.f32 0.2, %v301_v62  ;;  %vm303_vm8 = vcmp.gt.f32.partialorder %v301_v62, 0.0 }
  0x97   : > { %v306_v59 = vsel %vm302_vm7, %v300_v56, %v304_v57 }
  0x98   : > { %v884_v60 = vadd.f32 %v860_v17, %v306_v59 }
  0x9a   : > { %383 = vmax.xlane.f32.xlu2 %v382_v49  ;;  %386 = vmax.xlane.f32.xlu1 %v385_v50  ;;  %v467_v53 = vpop.permute.xlu1 %466  ;;  %v534_v58 = vpop.permute.xlu0 %533  ;;  %v311_v61 = vsel %vm310_vm2, %v884_v60, -inf }
  0x9b   : > { %482 = vmatpush.bf16.msra.mxu2 %v467_v53  ;;  %546 = vmatpush.bf16.msra.mxu3 %v534_v58 }
  0x9e   : > { %403 = vrot.lane.b32.xlu0 %v828_v0, %s778_s16  ;;  %v307_v0 = vsel %vm303_vm8, %v301_v62, %v305_v63 }
  0x9f   : > { %v888_v1 = vadd.f32 %v705_v36, %v307_v0 }
  0xa1   : > { %v314_v2 = vsel %vm310_vm2, %v888_v1, -inf }
  0xb2   : > { %531 = vrot.lane.b32.xlu2 %v836_v4, %s777_s9 }
  0xb3   : > { %401 = vrot.lane.b32.xlu1 %v836_v4, %s778_s16 }
  0xc8   : > { %312 = vmax.xlane.f32.xlu0 %v311_v61 }
  0xdb   : > { %315 = vmax.xlane.f32.xlu2 %v314_v2 }
  0xfd   : > { %v449_v3 = vpop.xlane.xlu2 %448  ;;  %v514_v6 = vpop.xlane.xlu0 %513 }
  0xfe   : > { %v453_v4 = vsub.f32 %v867_v25, %v449_v3  ;;  %v518_v12 = vsub.f32 %v864_v24, %v514_v6 }
 0x100   : > { %v455_v5 = vmul.f32 1.442695, %v453_v4  ;;  %v520_v16 = vmul.f32 1.442695, %v518_v12 }
 0x102   : > { %732 = vpow2.f32 %v455_v5 }
 0x105   : > { %v517_v7 = vpop.xlane.xlu2 %516  ;;  %v452_v8 = vpop.xlane.xlu1 %451 }
 0x106   : > { %v519_v9 = vsub.f32 %v511_v41, %v517_v7  ;;  %v454_v10 = vsub.f32 %v446_v42, %v452_v8 }
 0x108   : > { %v733_v11 = vpop.eup %732  ;;  %v522_v13 = vmul.f32 1.442695, %v519_v9  ;;  %v457_v14 = vmul.f32 1.442695, %v454_v10 }
 0x109   : > { %v459_v15 = vsel %vm310_vm2, %v733_v11, 0.0 }
 0x10a   : > { %734 = vpow2.f32 %v522_v13  ;;  %460 = vadd.xlane.f32.xlu2 %v459_v15 }
 0x10b   : > { %736 = vpow2.f32 %v457_v14 }
 0x10c   : > { %738 = vpow2.f32 %v520_v16 }
 0x10d   : > { %v384_v17 = vpop.xlane.xlu2 %383  ;;  %v387_v18 = vpop.xlane.xlu1 %386 }
 0x10e   : > { %v388_v19 = vsub.f32 %v380_v47, %v384_v17  ;;  %v389_v20 = vsub.f32 %v381_v48, %v387_v18  ;;  %v730_v17 = vld [vmem:[%s934_s4] ss:$0 sm:$0xff] }
 0x110   : > { %v735_v21 = vpop.eup %734  ;;  %v390_v22 = vmul.f32 1.442695, %v388_v19  ;;  %v392_v23 = vmul.f32 1.442695, %v389_v20  ;;  %v404_v25 = vpop.permute.xlu0 %403  ;;  %v731_v20 = vld [vmem:[%s935_s5] ss:$0 sm:$0xff] }
 0x111   : > { %v737_v26 = vpop.eup %736  ;;  %v527_v24 = vsel %vm310_vm2, %v735_v21, 0.0  ;;  %416 = vmatpush.bf16.msra.mxu1 %v404_v25 }
 0x112   : > { %740 = vpow2.f32 %v390_v22  ;;  %528 = vadd.xlane.f32.xlu2 %v527_v24  ;;  %v465_v27 = vpack.c.bf16 %v737_v26, %v733_v11  ;;  %v739_v29 = vpop.eup %738  ;;  %v462_v35 = vsel %vm310_vm2, %v737_v26, 0.0 }
 0x113   : > { %742 = vpow2.f32 %v392_v23  ;;  %v530_v30 = vpack.c.bf16 %v735_v21, %v739_v29  ;;  %v524_v36 = vsel %vm310_vm2, %v739_v29, 0.0 }
 0x114   : > { %696 = vmatmul.msk.bf16.vlgmr.msra.gmra.mxu2 %vm310_vm2, %v465_v27 }
 0x115   : > { %v532_v28 = vpop.permute.xlu2 %531 }
 0x116   : > { %547 = vmatpush.bf16.msra.mxu3 %v532_v28 }
 0x118   : > { %v741_v31 = vpop.eup %740 }
 0x119   : > { %v743_v32 = vpop.eup %742  ;;  %697 = vmatmul.msk.bf16.vlgmr.msra.gmra.mxu3 %vm310_vm2, %v530_v30  ;;  %v394_v33 = vsel %vm310_vm2, %v741_v31, 0.0 }
 0x11a   : > { %395 = vadd.xlane.f32.xlu1 %v394_v33  ;;  %v397_v34 = vsel %vm310_vm2, %v743_v32, 0.0  ;;  %v400_v38 = vpack.c.bf16 %v743_v32, %v741_v31 }
 0x11b   : > { %398 = vadd.xlane.f32.xlu0 %v397_v34 }
 0x122   : > { %463 = vadd.xlane.f32.xlu1 %v462_v35 }
 0x123   : > { %525 = vadd.xlane.f32.xlu0 %v524_v36 }
 0x125   : > { %v402_v37 = vpop.permute.xlu1 %401 }
 0x126   : > { %417 = vmatpush.bf16.msra.mxu1 %v402_v37 }
 0x129   : > { %695 = vmatmul.msk.bf16.vlgmr.msra.gmra.mxu1 %vm310_vm2, %v400_v38 }
 0x13b   : > { %v313_v39 = vpop.xlane.xlu0 %312 }
 0x13c   : > { %v317_v40 = vsub.f32 %v884_v60, %v313_v39 }
 0x13e   : > { %v319_v41 = vmul.f32 1.442695, %v317_v40 }
 0x140   : > { %744 = vpow2.f32 %v319_v41 }
 0x146   : > { %v745_v42 = vpop.eup %744 }
 0x147   : > { %v323_v43 = vsel %vm310_vm2, %v745_v42, 0.0 }
 0x148   : > { %324 = vadd.xlane.f32.xlu1 %v323_v43 }
 0x14e   : > { %v316_v44 = vpop.xlane.xlu2 %315 }
 0x14f   : > { %v318_v45 = vsub.f32 %v888_v1, %v316_v44 }
 0x151   : > { %v321_v46 = vmul.f32 1.442695, %v318_v45 }
 0x153   : > { %746 = vpow2.f32 %v321_v46 }
 0x159   : > { %v747_v47 = vpop.eup %746 }
 0x15a   : > { %v326_v48 = vsel %vm310_vm2, %v747_v47, 0.0  ;;  %v329_v49 = vpack.c.bf16 %v747_v47, %v745_v42 }
 0x15b   : > { %327 = vadd.xlane.f32.xlu0 %v326_v48 }
 0x15c   : > { %694 = vmatmul.msk.bf16.vlgmr.msra.gmra.mxu0 %vm310_vm2, %v329_v49 }
 0x17d   : > { %v461_v50 = vpop.xlane.xlu2 %460 }
 0x17e   : > { %748 = vrcp.f32 %v461_v50 }
 0x184   : > { %v749_v53 = vpop.eup %748 }
 0x185   : > { %v529_v2 = vpop.xlane.xlu2 %528 }
 0x18d   : > { %v396_v56 = vpop.xlane.xlu1 %395 }
 0x18e   : > { %v399_v51 = vpop.xlane.xlu0 %398 }
 0x195   : > { %v464_v60 = vpop.xlane.xlu1 %463 }
 0x196   : > { %v526_v52 = vpop.xlane.xlu0 %525 }
 0x197   : > { %750 = vrcp.f32 %v526_v52  ;;  %v484_v54 = vpop.f32.mrf.mxu2 }
 0x198   : > { %v491_v55 = vmul.f32 %v749_v53, %v484_v54  ;;  %752 = vrcp.f32 %v396_v56 }
 0x199   : > { %754 = vrcp.f32 %v399_v51 }
 0x19a   : > { %568 = vrot.lane.b32.xlu0 %v491_v55, %s779_s17  ;;  %756 = vrcp.f32 %v464_v60 }
 0x19b   : > { %758 = vrcp.f32 %v529_v2 }
 0x19c   : > { %v549_v58 = vpop.f32.mrf.mxu3 }
 0x19d   : > { %v751_v57 = vpop.eup %750 }
 0x19e   : > { %v556_v59 = vmul.f32 %v751_v57, %v549_v58  ;;  %v753_v61 = vpop.eup %752 }
 0x19f   : > { %v486_v0 = vpop.f32.mrf.mxu2  ;;  %v755_v1 = vpop.eup %754 }
 0x1a0   : > { %v757_v3 = vpop.eup %756 }
 0x1a1   : > { %v492_v5 = vmul.f32 %v757_v3, %v486_v0  ;;  %v759_v8 = vpop.eup %758 }
 0x1a2   : > { %576 = vrot.lane.b32.xlu0 %v556_v59, %s780_s18 }
 0x1a4   : > { %v551_v7 = vpop.f32.mrf.mxu3 }
 0x1a5   : > { %v557_v9 = vmul.f32 %v759_v8, %v551_v7 }
 0x1a6   : > { %v419_v62 = vpop.f32.mrf.mxu1 }
 0x1a7   : > { %v426_v63 = vmul.f32 %v753_v61, %v419_v62 }
 0x1a9   : > { %560 = vrot.lane.b32.xlu2 %v426_v63, %s781_s19 }
 0x1ae   : > { %v421_v4 = vpop.f32.mrf.mxu1 }
 0x1af   : > { %v427_v6 = vmul.f32 %v755_v1, %v421_v4 }
 0x1b1   : > { %570 = vrot.lane.b32.xlu2 %v492_v5, %s779_s17  ;;  %562 = vrot.lane.b32.xlu1 %v427_v6, %s781_s19 }
 0x1b9   : > { %578 = vrot.lane.b32.xlu1 %v557_v9, %s780_s18 }
 0x1bb   : > { %v325_v11 = vpop.xlane.xlu1 %324 }
 0x1bc   : > { %760 = vrcp.f32 %v325_v11 }
 0x1c2   : > { %v761_v14 = vpop.eup %760 }
 0x1ce   : > { %v328_v10 = vpop.xlane.xlu0 %327 }
 0x1cf   : > { %762 = vrcp.f32 %v328_v10 }
 0x1d5   : > { %v763_v28 = vpop.eup %762 }
 0x1d9   : > { %v354_v13 = vpop.f32.mrf.mxu0 }
 0x1da   : > { %v361_v16 = vmul.f32 %v761_v14, %v354_v13 }
 0x1e1   : > { %v356_v24 = vpop.f32.mrf.mxu0 }
 0x1e2   : > { %v362_v29 = vmul.f32 %v763_v28, %v356_v24 }
 0x203   : > { %v561_v15 = vpop.permute.xlu2 %560 }
 0x204   : > { %v583_v18 = vsel %vm582_vm9, %v361_v16, %v561_v15 }
 0x20b   : > { %v571_v31 = vpop.permute.xlu2 %570 }
 0x20c   : > { %v569_v12 = vpop.permute.xlu0 %568 }
 0x20d   : > { %v586_v19 = vsel %vm585_vm10, %v583_v18, %v569_v12 }
 0x214   : > { %v577_v21 = vpop.permute.xlu0 %576 }
 0x215   : > { %v589_v22 = vsel %vm588_vm11, %v586_v19, %v577_v21 }
 0x216   : > { %v595_v23 = vmul.f32 %v730_v17, %v589_v22 }
 0x218   : > { %v601_v25 = vadd.f32 %v731_v20, %v595_v23 }
 0x21a   : > { %v603_v26 = vmax.f32 %v601_v25, 0.0 }
 0x21c   : > { %605 = vst.msk [vmem:[%s275_s29] sm:$0xff] %vm310_vm2, %v603_v26 }
 0x223   : > { %v563_v27 = vpop.permute.xlu1 %562 }
 0x224   : > { %v584_v30 = vsel %vm582_vm9, %v362_v29, %v563_v27 }
 0x225   : > { %v587_v33 = vsel %vm585_vm10, %v584_v30, %v571_v31 }
 0x22b   : > { %v579_v32 = vpop.permute.xlu1 %578 }
 0x22c   : > { %v590_v34 = vsel %vm588_vm11, %v587_v33, %v579_v32 }
 0x22d   : > { %v596_v35 = vmul.f32 %v730_v17, %v590_v34 }
 0x22f   : > { %v602_v36 = vadd.f32 %v731_v20, %v596_v35 }
 0x231   : > { %v604_v37 = vmax.f32 %v602_v36, 0.0 }
 0x233   : > { %606 = vst.msk [vmem:[%s275_s29 + $0x8] sm:$0xff] %vm310_vm2, %v604_v37 }
 0x234 PF: > { %s16_s21 = sadd.s32 1, %s770_s21  }
 0x235   : > { %p13_p4 = scmp.ge.s32.totalorder %s16_s21, 4  }
 0x237   :  { %15 = sbr.rel (!%p13_p4) target bundleno = 1 (0x1), region = 77 }

</bundles_post_ra>
